<compile_context>
chip_gen: v7x
topology: tpu7x:2x2x1
jax: 0.10.0
libtpu: 0.0.40
codegen_flags: <defaults>
</compile_context>

<pallas_src>
import math
import functools

import jax
import jax.numpy as jnp
from jax.experimental import pallas as pl
from jax.experimental.pallas import tpu as pltpu


# ----------------------------- kernel helpers ------------------------------
def _layernorm(x, gamma, beta, eps):
    # x: (R, D), gamma/beta: (1, D). Biased variance, matching nn.LayerNorm.
    mean = jnp.mean(x, axis=-1, keepdims=True)
    var = jnp.mean((x - mean) ** 2, axis=-1, keepdims=True)
    return (x - mean) * jax.lax.rsqrt(var + eps) * gamma + beta


# ------------------------------ fused kernel --------------------------------
def fused_encoder_kernel(emb_ref, eg_ref, eb_ref,
                         wq_ref, wk_ref, wv_ref, wh_ref, bh_ref,
                         w1_ref, b1_ref, w2_ref, b2_ref,
                         g1_ref, be1_ref, g2_ref, be2_ref,
                         out_ref, x_vmem,
                         *, num_heads, d_k, seq_len, bt):
    l = pl.program_id(1)

    # First layer step of each batch tile: Embeddings.LayerNorm (eps=1e-12)
    # into the VMEM-resident hidden state.
    @pl.when(l == 0)
    def _():
        e = emb_ref[...].astype(jnp.float32)
        x_vmem[...] = _layernorm(e, eg_ref[...], eb_ref[...], 1e-12)

    x = x_vmem[...]                               # (R, D) f32, R = bt * seq_len
    xb = x.astype(jnp.bfloat16)

    wq = wq_ref[0]                                # (H, D, d_k) bf16 (pre-scaled)
    wk = wk_ref[0]                                # (H, D, d_k) bf16
    wv = wv_ref[0]                                # (H, D, d_k) bf16
    wh = wh_ref[0]                                # (H, d_k, D) bf16

    # --- Multi-head attention -----------------------------------------------
    # Head split lives in the weight layout, so projections are full-row
    # matmuls and only leading-dim reshapes are needed (no lane shuffles).
    q_parts, k_parts, v_parts = [], [], []
    for h in range(num_heads):
        q_parts.append(jnp.dot(xb, wq[h], preferred_element_type=jnp.float32))
        k_parts.append(jnp.dot(xb, wk[h], preferred_element_type=jnp.float32))
        v_parts.append(jnp.dot(xb, wv[h], preferred_element_type=jnp.float32))
    hb = num_heads * bt
    q_all = jnp.stack(q_parts, axis=0).reshape(hb, seq_len, d_k)
    k_all = jnp.stack(k_parts, axis=0).reshape(hb, seq_len, d_k)
    v_all = jnp.stack(v_parts, axis=0).reshape(hb, seq_len, d_k)

    # One batched contraction across (head x batch) for scores and for P@V.
    s = jnp.einsum('bqd,bkd->bqk',
                   q_all.astype(jnp.bfloat16), k_all.astype(jnp.bfloat16),
                   preferred_element_type=jnp.float32)        # (H*bt, S, S)
    s = s - jnp.max(s, axis=-1, keepdims=True)
    p = jnp.exp(s)
    p = p * pl.reciprocal(jnp.sum(p, axis=-1, keepdims=True), approx=True)
    ctx = jnp.einsum('bqk,bkd->bqd',
                     p.astype(jnp.bfloat16), v_all.astype(jnp.bfloat16),
                     preferred_element_type=jnp.float32)      # (H*bt, S, d_k)

    # Output projection: sum of per-head slabs == concat(heads) @ W_h.
    ctx = ctx.reshape(num_heads, bt * seq_len, d_k).astype(jnp.bfloat16)
    attn = jnp.dot(ctx[0], wh[0], preferred_element_type=jnp.float32)
    for h in range(1, num_heads):
        attn = attn + jnp.dot(ctx[h], wh[h], preferred_element_type=jnp.float32)
    attn = attn + bh_ref[0]                                   # (R, D)

    # --- residual + LayerNorm1 (eps=1e-6) ------------------------------------
    out1 = _layernorm(x + attn, g1_ref[0], be1_ref[0], 1e-6)

    # --- FFN ------------------------------------------------------------------
    h1 = jnp.dot(out1.astype(jnp.bfloat16), w1_ref[0],
                 preferred_element_type=jnp.float32) + b1_ref[0]
    h1 = jnp.maximum(h1, 0.0)
    ffn = jnp.dot(h1.astype(jnp.bfloat16), w2_ref[0],
                  preferred_element_type=jnp.float32) + b2_ref[0]

    # --- residual + LayerNorm2 (eps=1e-6) ------------------------------------
    out2 = _layernorm(out1 + ffn, g2_ref[0], be2_ref[0], 1e-6)
    x_vmem[...] = out2

    # Single HBM writeback at the last layer step of this batch tile.
    @pl.when(l == pl.num_programs(1) - 1)
    def _():
        out_ref[...] = out2.astype(out_ref.dtype)


# --------------------------- parameter packing -------------------------------
def _pack_layer_params(layers, num_heads, d_k):
    """Stack per-layer params on a leading L axis, split heads on the weights,
    fold 1/sqrt(d_k) into Wq, and cast matmul weights to bf16."""
    L = len(layers)
    D = layers[0]["wq"].shape[0]

    def stack(name):
        return jnp.stack([lp[name] for lp in layers], axis=0)

    def split_out(w):  # (L, D, H*d_k) -> (L, H, D, d_k)   (output-feature split)
        return jnp.transpose(w.reshape(L, D, num_heads, d_k), (0, 2, 1, 3))

    return dict(
        wq=split_out(stack("wq") / math.sqrt(d_k)).astype(jnp.bfloat16),
        wk=split_out(stack("wk")).astype(jnp.bfloat16),
        wv=split_out(stack("wv")).astype(jnp.bfloat16),
        # W_h: (L, H*d_k, D) -> (L, H, d_k, D)   (input rows are head-major)
        wh=stack("wh").reshape(L, num_heads, d_k, D).astype(jnp.bfloat16),
        bh=stack("bh"),
        w1=stack("w1").astype(jnp.bfloat16), b1=stack("b1"),
        w2=stack("w2").astype(jnp.bfloat16), b2=stack("b2"),
        ln1_g=stack("ln1_g"), ln1_b=stack("ln1_b"),
        ln2_g=stack("ln2_g"), ln2_b=stack("ln2_b"),
    )


def _pick_batch_tile(B, S, target_rows=128):
    """Largest divisor of B whose tile has <= ~target_rows rows (MXU row fill)."""
    cap = max(1, target_rows // max(S, 1))
    bt = 1
    for cand in range(1, B + 1):
        if B % cand == 0 and cand <= cap:
            bt = cand
    return bt


# ------------------------------ forward wrapper ------------------------------
def trans_encoder_forward(token_ids, params, num_heads, batch_tile=None):
    B, S = token_ids.shape
    emb_table = params["emb"]
    D = emb_table.shape[1]
    layers = params["layers"]
    L = len(layers)
    H = num_heads
    d_k = D // H
    F = layers[0]["w1"].shape[1]

    bt = batch_tile if batch_tile is not None else _pick_batch_tile(B, S)
    assert B % bt == 0
    n_bt = B // bt
    R = bt * S

    packed = _pack_layer_params(layers, H, d_k)

    # TODO(synk): the embedding row gather stays in plain JAX; fusing it would
    # need scalar-prefetched token ids + a pl.Element row-gather BlockSpec.
    emb = jnp.take(emb_table, token_ids.reshape(-1), axis=0)   # (B*S, D) f32

    kernel = functools.partial(fused_encoder_kernel,
                               num_heads=H, d_k=d_k, seq_len=S, bt=bt)

    def rows(b, l): return (b, 0)
    def const2(b, l): return (0, 0)
    def per_layer3(b, l): return (l, 0, 0)
    def per_layer4(b, l): return (l, 0, 0, 0)

    in_specs = [
        pl.BlockSpec((R, D), rows),                 # token embeddings (rows)
        pl.BlockSpec((1, D), const2),               # emb LN gamma
        pl.BlockSpec((1, D), const2),               # emb LN beta
        pl.BlockSpec((1, H, D, d_k), per_layer4),   # Wq (head-split, scaled)
        pl.BlockSpec((1, H, D, d_k), per_layer4),   # Wk
        pl.BlockSpec((1, H, D, d_k), per_layer4),   # Wv
        pl.BlockSpec((1, H, d_k, D), per_layer4),   # Wh
        pl.BlockSpec((1, 1, D), per_layer3),        # bh
        pl.BlockSpec((1, D, F), per_layer3),        # W1
        pl.BlockSpec((1, 1, F), per_layer3),        # b1
        pl.BlockSpec((1, F, D), per_layer3),        # W2
        pl.BlockSpec((1, 1, D), per_layer3),        # b2
        pl.BlockSpec((1, 1, D), per_layer3),        # ln1 gamma
        pl.BlockSpec((1, 1, D), per_layer3),        # ln1 beta
        pl.BlockSpec((1, 1, D), per_layer3),        # ln2 gamma
        pl.BlockSpec((1, 1, D), per_layer3),        # ln2 beta
    ]

    # NOTE: for scaled-up configs (large D/F) set vmem_limit_bytes explicitly
    # and tile W1/W2 along F so per-layer weights fit v7x's 64 MiB VMEM.
    out = pl.pallas_call(
        kernel,
        out_shape=jax.ShapeDtypeStruct((B * S, D), jnp.float32),
        grid=(n_bt, L),
        in_specs=in_specs,
        out_specs=pl.BlockSpec((R, D), rows),
        scratch_shapes=[pltpu.VMEM((R, D), jnp.float32)],
        compiler_params=pltpu.CompilerParams(
            dimension_semantics=("parallel", "arbitrary")),
    )(emb, params["emb_ln_g"], params["emb_ln_b"],
      packed["wq"], packed["wk"], packed["wv"], packed["wh"], packed["bh"],
      packed["w1"], packed["b1"], packed["w2"], packed["b2"],
      packed["ln1_g"], packed["ln1_b"], packed["ln2_g"], packed["ln2_b"])

    return out.reshape(B, S, D)


# --------------------------- parameter init ---------------------------------
def init_params(key, num_layers, d_model, ff_hidden_dim, vocab_size):
    keys = jax.random.split(key, 1 + num_layers)
    # embedding table, padding_idx=1 row zeroed (as nn.Embedding does at init)
    emb = 0.02 * jax.random.normal(keys[0], (vocab_size, d_model), jnp.float32)
    emb = emb.at[1].set(0.0)
    emb_ln_g = jnp.ones((1, d_model), jnp.float32)
    emb_ln_b = jnp.zeros((1, d_model), jnp.float32)

    layers = []
    for li in range(num_layers):
        ks = jax.random.split(keys[1 + li], 6)
        D, F = d_model, ff_hidden_dim
        layers.append(dict(
            wq=0.02 * jax.random.normal(ks[0], (D, D), jnp.float32),
            wk=0.02 * jax.random.normal(ks[1], (D, D), jnp.float32),
            wv=0.02 * jax.random.normal(ks[2], (D, D), jnp.float32),
            wh=0.02 * jax.random.normal(ks[3], (D, D), jnp.float32),
            bh=jnp.zeros((1, D), jnp.float32),
            w1=0.02 * jax.random.normal(ks[4], (D, F), jnp.float32),
            b1=jnp.zeros((1, F), jnp.float32),
            w2=0.02 * jax.random.normal(ks[5], (F, D), jnp.float32),
            b2=jnp.zeros((1, D), jnp.float32),
            ln1_g=jnp.ones((1, D), jnp.float32),
            ln1_b=jnp.zeros((1, D), jnp.float32),
            ln2_g=jnp.ones((1, D), jnp.float32),
            ln2_b=jnp.zeros((1, D), jnp.float32),
        ))
    return dict(emb=emb, emb_ln_g=emb_ln_g, emb_ln_b=emb_ln_b, layers=layers)


# --------------------------------- main -------------------------------------
if __name__ == "__main__":
    # Small config consistent with TransEncoder(num_layers=2, d_model=32,
    # num_heads=4, ff_hidden_dim=64, input_vocab_size=50, max_pos=16)
    num_layers = 2
    d_model = 32
    num_heads = 4
    ff_hidden_dim = 64
    vocab_size = 50
    B, S = 2, 8

    key = jax.random.PRNGKey(0)
    pkey, dkey = jax.random.split(key)
    params = init_params(pkey, num_layers, d_model, ff_hidden_dim, vocab_size)
    token_ids = jax.random.randint(dkey, (B, S), 0, vocab_size, dtype=jnp.int32)

    out = trans_encoder_forward(token_ids, params, num_heads)
    out = jax.block_until_ready(out)
    assert out.shape == (B, S, d_model)
    assert jnp.all(jnp.isfinite(out))
    print("KERNEL_OK")
</pallas_src>

<mosaic_0001>
module attributes {stable_mosaic.version = 11 : i64} {
  func.func @fused_encoder_kernel(%arg0: i32, %arg1: i32, %arg2: memref<16x32xf32, #tpu.memory_space<vmem>>, %arg3: memref<1x32xf32, #tpu.memory_space<vmem>>, %arg4: memref<1x32xf32, #tpu.memory_space<vmem>>, %arg5: memref<1x4x32x8xbf16, #tpu.memory_space<vmem>>, %arg6: memref<1x4x32x8xbf16, #tpu.memory_space<vmem>>, %arg7: memref<1x4x32x8xbf16, #tpu.memory_space<vmem>>, %arg8: memref<1x4x8x32xbf16, #tpu.memory_space<vmem>>, %arg9: memref<1x1x32xf32, #tpu.memory_space<vmem>>, %arg10: memref<1x32x64xbf16, #tpu.memory_space<vmem>>, %arg11: memref<1x1x64xf32, #tpu.memory_space<vmem>>, %arg12: memref<1x64x32xbf16, #tpu.memory_space<vmem>>, %arg13: memref<1x1x32xf32, #tpu.memory_space<vmem>>, %arg14: memref<1x1x32xf32, #tpu.memory_space<vmem>>, %arg15: memref<1x1x32xf32, #tpu.memory_space<vmem>>, %arg16: memref<1x1x32xf32, #tpu.memory_space<vmem>>, %arg17: memref<1x1x32xf32, #tpu.memory_space<vmem>>, %arg18: memref<16x32xf32, #tpu.memory_space<vmem>>, %arg19: memref<16x32xf32, #tpu.memory_space<vmem>>) attributes {dimension_semantics = [#tpu.dimension_semantics<parallel>, #tpu.dimension_semantics<arbitrary>], iteration_bounds = array<i64: 1, 2>, scalar_prefetch = 0 : i64, scratch_operands = 1 : i64, tpu.core_type = #tpu.core_type<tc>, window_params = [{transform_indices = @transform_0, window_bounds = array<i64: 16, 32>}, {pipeline_mode = #tpu.pipeline_mode<synchronous>, transform_indices = @transform_1, window_bounds = array<i64: 1, 32>}, {pipeline_mode = #tpu.pipeline_mode<synchronous>, transform_indices = @transform_2, window_bounds = array<i64: 1, 32>}, {transform_indices = @transform_3, window_bounds = array<i64: 1, 4, 32, 8>}, {transform_indices = @transform_4, window_bounds = array<i64: 1, 4, 32, 8>}, {transform_indices = @transform_5, window_bounds = array<i64: 1, 4, 32, 8>}, {transform_indices = @transform_6, window_bounds = array<i64: 1, 4, 8, 32>}, {transform_indices = @transform_7, window_bounds = array<i64: 1, 1, 32>}, {transform_indices = @transform_8, window_bounds = array<i64: 1, 32, 64>}, {transform_indices = @transform_9, window_bounds = array<i64: 1, 1, 64>}, {transform_indices = @transform_10, window_bounds = array<i64: 1, 64, 32>}, {transform_indices = @transform_11, window_bounds = array<i64: 1, 1, 32>}, {transform_indices = @transform_12, window_bounds = array<i64: 1, 1, 32>}, {transform_indices = @transform_13, window_bounds = array<i64: 1, 1, 32>}, {transform_indices = @transform_14, window_bounds = array<i64: 1, 1, 32>}, {transform_indices = @transform_15, window_bounds = array<i64: 1, 1, 32>}, {transform_indices = @transform_16, window_bounds = array<i64: 16, 32>}]} {
    %c0_i32 = arith.constant 0 : i32
    %0 = arith.cmpi eq, %arg1, %c0_i32 : i32
    %1 = arith.extui %0 : i1 to i32
    %c0_i32_0 = arith.constant 0 : i32
    %2 = arith.cmpi ne, %1, %c0_i32_0 : i32
    scf.if %2 {
      %c0_80 = arith.constant 0 : index
      %c0_81 = arith.constant 0 : index
      %188 = vector.load %arg2[%c0_80, %c0_81] : memref<16x32xf32, #tpu.memory_space<vmem>>, vector<16x32xf32>
      %c0_82 = arith.constant 0 : index
      %c0_83 = arith.constant 0 : index
      %189 = vector.load %arg3[%c0_82, %c0_83] : memref<1x32xf32, #tpu.memory_space<vmem>>, vector<1x32xf32>
      %c0_84 = arith.constant 0 : index
      %c0_85 = arith.constant 0 : index
      %190 = vector.load %arg4[%c0_84, %c0_85] : memref<1x32xf32, #tpu.memory_space<vmem>>, vector<1x32xf32>
      %cst_86 = arith.constant dense<0.000000e+00> : vector<16xf32>
      %191 = vector.multi_reduction <add>, %188, %cst_86 [1] : vector<16x32xf32> to vector<16xf32>
      %192 = vector.shape_cast %191 : vector<16xf32> to vector<16x1xf32>
      %cst_87 = arith.constant 3.200000e+01 : f32
      %193 = vector.broadcast %cst_87 : f32 to vector<16x1xf32>
      %194 = arith.divf %192, %193 : vector<16x1xf32>
      %195 = vector.broadcast %194 : vector<16x1xf32> to vector<16x32xf32>
      %196 = arith.subf %188, %195 : vector<16x32xf32>
      %197 = arith.mulf %196, %196 : vector<16x32xf32>
      %cst_88 = arith.constant dense<0.000000e+00> : vector<16xf32>
      %198 = vector.multi_reduction <add>, %197, %cst_88 [1] : vector<16x32xf32> to vector<16xf32>
      %199 = vector.shape_cast %198 : vector<16xf32> to vector<16x1xf32>
      %cst_89 = arith.constant 3.200000e+01 : f32
      %200 = vector.broadcast %cst_89 : f32 to vector<16x1xf32>
      %201 = arith.divf %199, %200 : vector<16x1xf32>
      %202 = vector.broadcast %194 : vector<16x1xf32> to vector<16x32xf32>
      %203 = arith.subf %188, %202 : vector<16x32xf32>
      %cst_90 = arith.constant 9.99999996E-13 : f32
      %204 = vector.broadcast %cst_90 : f32 to vector<16x1xf32>
      %205 = arith.addf %201, %204 : vector<16x1xf32>
      %206 = math.rsqrt %205 : vector<16x1xf32>
      %207 = vector.broadcast %206 : vector<16x1xf32> to vector<16x32xf32>
      %208 = arith.mulf %203, %207 : vector<16x32xf32>
      %209 = vector.broadcast %189 : vector<1x32xf32> to vector<16x32xf32>
      %210 = arith.mulf %208, %209 : vector<16x32xf32>
      %211 = vector.broadcast %190 : vector<1x32xf32> to vector<16x32xf32>
      %212 = arith.addf %210, %211 : vector<16x32xf32>
      %c0_91 = arith.constant 0 : index
      %c0_92 = arith.constant 0 : index
      %213 = vector.load %arg19[%c0_91, %c0_92] : memref<16x32xf32, #tpu.memory_space<vmem>>, vector<16x32xf32>
      tpu.vector_store %arg19[%c0_91, %c0_92], %212 {strides = array<i32>} : memref<16x32xf32, #tpu.memory_space<vmem>>, vector<16x32xf32>,
    } else {
    }
    %c0 = arith.constant 0 : index
    %c0_1 = arith.constant 0 : index
    %3 = vector.load %arg19[%c0, %c0_1] : memref<16x32xf32, #tpu.memory_space<vmem>>, vector<16x32xf32>
    %4 = arith.truncf %3 : vector<16x32xf32> to vector<16x32xbf16>
    %c0_2 = arith.constant 0 : index
    %c0_3 = arith.constant 0 : index
    %c0_4 = arith.constant 0 : index
    %c0_5 = arith.constant 0 : index
    %5 = vector.load %arg5[%c0_2, %c0_3, %c0_4, %c0_5] : memref<1x4x32x8xbf16, #tpu.memory_space<vmem>>, vector<1x4x32x8xbf16>
    %6 = vector.shape_cast %5 : vector<1x4x32x8xbf16> to vector<4x32x8xbf16>
    %c0_6 = arith.constant 0 : index
    %c0_7 = arith.constant 0 : index
    %c0_8 = arith.constant 0 : index
    %c0_9 = arith.constant 0 : index
    %7 = vector.load %arg6[%c0_6, %c0_7, %c0_8, %c0_9] : memref<1x4x32x8xbf16, #tpu.memory_space<vmem>>, vector<1x4x32x8xbf16>
    %8 = vector.shape_cast %7 : vector<1x4x32x8xbf16> to vector<4x32x8xbf16>
    %c0_10 = arith.constant 0 : index
    %c0_11 = arith.constant 0 : index
    %c0_12 = arith.constant 0 : index
    %c0_13 = arith.constant 0 : index
    %9 = vector.load %arg7[%c0_10, %c0_11, %c0_12, %c0_13] : memref<1x4x32x8xbf16, #tpu.memory_space<vmem>>, vector<1x4x32x8xbf16>
    %10 = vector.shape_cast %9 : vector<1x4x32x8xbf16> to vector<4x32x8xbf16>
    %c0_14 = arith.constant 0 : index
    %c0_15 = arith.constant 0 : index
    %c0_16 = arith.constant 0 : index
    %c0_17 = arith.constant 0 : index
    %11 = vector.load %arg8[%c0_14, %c0_15, %c0_16, %c0_17] : memref<1x4x8x32xbf16, #tpu.memory_space<vmem>>, vector<1x4x8x32xbf16>
    %12 = vector.shape_cast %11 : vector<1x4x8x32xbf16> to vector<4x8x32xbf16>
    %13 = vector.extract_strided_slice %6 {offsets = [0, 0, 0], sizes = [1, 32, 8], strides = [1, 1, 1]} : vector<4x32x8xbf16> to vector<1x32x8xbf16>
    %14 = vector.shape_cast %13 : vector<1x32x8xbf16> to vector<32x8xbf16>
    %cst = arith.constant dense<0.000000e+00> : vector<16x8xf32>
    %15 = tpu.matmul %4, %14, %cst {dimension_numbers = #tpu.dot_dimension_numbers<[1], [0], [0], [1], [0, 0, 1, 1], [], []>} : vector<16x32xbf16>, vector<32x8xbf16>, vector<16x8xf32> -> vector<16x8xf32>
    %16 = vector.extract_strided_slice %8 {offsets = [0, 0, 0], sizes = [1, 32, 8], strides = [1, 1, 1]} : vector<4x32x8xbf16> to vector<1x32x8xbf16>
    %17 = vector.shape_cast %16 : vector<1x32x8xbf16> to vector<32x8xbf16>
    %cst_18 = arith.constant dense<0.000000e+00> : vector<16x8xf32>
    %18 = tpu.matmul %4, %17, %cst_18 {dimension_numbers = #tpu.dot_dimension_numbers<[1], [0], [0], [1], [0, 0, 1, 1], [], []>} : vector<16x32xbf16>, vector<32x8xbf16>, vector<16x8xf32> -> vector<16x8xf32>
    %19 = vector.extract_strided_slice %10 {offsets = [0, 0, 0], sizes = [1, 32, 8], strides = [1, 1, 1]} : vector<4x32x8xbf16> to vector<1x32x8xbf16>
    %20 = vector.shape_cast %19 : vector<1x32x8xbf16> to vector<32x8xbf16>
    %cst_19 = arith.constant dense<0.000000e+00> : vector<16x8xf32>
    %21 = tpu.matmul %4, %20, %cst_19 {dimension_numbers = #tpu.dot_dimension_numbers<[1], [0], [0], [1], [0, 0, 1, 1], [], []>} : vector<16x32xbf16>, vector<32x8xbf16>, vector<16x8xf32> -> vector<16x8xf32>
    %22 = vector.extract_strided_slice %6 {offsets = [1, 0, 0], sizes = [1, 32, 8], strides = [1, 1, 1]} : vector<4x32x8xbf16> to vector<1x32x8xbf16>
    %23 = vector.shape_cast %22 : vector<1x32x8xbf16> to vector<32x8xbf16>
    %cst_20 = arith.constant dense<0.000000e+00> : vector<16x8xf32>
    %24 = tpu.matmul %4, %23, %cst_20 {dimension_numbers = #tpu.dot_dimension_numbers<[1], [0], [0], [1], [0, 0, 1, 1], [], []>} : vector<16x32xbf16>, vector<32x8xbf16>, vector<16x8xf32> -> vector<16x8xf32>
    %25 = vector.extract_strided_slice %8 {offsets = [1, 0, 0], sizes = [1, 32, 8], strides = [1, 1, 1]} : vector<4x32x8xbf16> to vector<1x32x8xbf16>
    %26 = vector.shape_cast %25 : vector<1x32x8xbf16> to vector<32x8xbf16>
    %cst_21 = arith.constant dense<0.000000e+00> : vector<16x8xf32>
    %27 = tpu.matmul %4, %26, %cst_21 {dimension_numbers = #tpu.dot_dimension_numbers<[1], [0], [0], [1], [0, 0, 1, 1], [], []>} : vector<16x32xbf16>, vector<32x8xbf16>, vector<16x8xf32> -> vector<16x8xf32>
    %28 = vector.extract_strided_slice %10 {offsets = [1, 0, 0], sizes = [1, 32, 8], strides = [1, 1, 1]} : vector<4x32x8xbf16> to vector<1x32x8xbf16>
    %29 = vector.shape_cast %28 : vector<1x32x8xbf16> to vector<32x8xbf16>
    %cst_22 = arith.constant dense<0.000000e+00> : vector<16x8xf32>
    %30 = tpu.matmul %4, %29, %cst_22 {dimension_numbers = #tpu.dot_dimension_numbers<[1], [0], [0], [1], [0, 0, 1, 1], [], []>} : vector<16x32xbf16>, vector<32x8xbf16>, vector<16x8xf32> -> vector<16x8xf32>
    %31 = vector.extract_strided_slice %6 {offsets = [2, 0, 0], sizes = [1, 32, 8], strides = [1, 1, 1]} : vector<4x32x8xbf16> to vector<1x32x8xbf16>
    %32 = vector.shape_cast %31 : vector<1x32x8xbf16> to vector<32x8xbf16>
    %cst_23 = arith.constant dense<0.000000e+00> : vector<16x8xf32>
    %33 = tpu.matmul %4, %32, %cst_23 {dimension_numbers = #tpu.dot_dimension_numbers<[1], [0], [0], [1], [0, 0, 1, 1], [], []>} : vector<16x32xbf16>, vector<32x8xbf16>, vector<16x8xf32> -> vector<16x8xf32>
    %34 = vector.extract_strided_slice %8 {offsets = [2, 0, 0], sizes = [1, 32, 8], strides = [1, 1, 1]} : vector<4x32x8xbf16> to vector<1x32x8xbf16>
    %35 = vector.shape_cast %34 : vector<1x32x8xbf16> to vector<32x8xbf16>
    %cst_24 = arith.constant dense<0.000000e+00> : vector<16x8xf32>
    %36 = tpu.matmul %4, %35, %cst_24 {dimension_numbers = #tpu.dot_dimension_numbers<[1], [0], [0], [1], [0, 0, 1, 1], [], []>} : vector<16x32xbf16>, vector<32x8xbf16>, vector<16x8xf32> -> vector<16x8xf32>
    %37 = vector.extract_strided_slice %10 {offsets = [2, 0, 0], sizes = [1, 32, 8], strides = [1, 1, 1]} : vector<4x32x8xbf16> to vector<1x32x8xbf16>
    %38 = vector.shape_cast %37 : vector<1x32x8xbf16> to vector<32x8xbf16>
    %cst_25 = arith.constant dense<0.000000e+00> : vector<16x8xf32>
    %39 = tpu.matmul %4, %38, %cst_25 {dimension_numbers = #tpu.dot_dimension_numbers<[1], [0], [0], [1], [0, 0, 1, 1], [], []>} : vector<16x32xbf16>, vector<32x8xbf16>, vector<16x8xf32> -> vector<16x8xf32>
    %40 = vector.extract_strided_slice %6 {offsets = [3, 0, 0], sizes = [1, 32, 8], strides = [1, 1, 1]} : vector<4x32x8xbf16> to vector<1x32x8xbf16>
    %41 = vector.shape_cast %40 : vector<1x32x8xbf16> to vector<32x8xbf16>
    %cst_26 = arith.constant dense<0.000000e+00> : vector<16x8xf32>
    %42 = tpu.matmul %4, %41, %cst_26 {dimension_numbers = #tpu.dot_dimension_numbers<[1], [0], [0], [1], [0, 0, 1, 1], [], []>} : vector<16x32xbf16>, vector<32x8xbf16>, vector<16x8xf32> -> vector<16x8xf32>
    %43 = vector.extract_strided_slice %8 {offsets = [3, 0, 0], sizes = [1, 32, 8], strides = [1, 1, 1]} : vector<4x32x8xbf16> to vector<1x32x8xbf16>
    %44 = vector.shape_cast %43 : vector<1x32x8xbf16> to vector<32x8xbf16>
    %cst_27 = arith.constant dense<0.000000e+00> : vector<16x8xf32>
    %45 = tpu.matmul %4, %44, %cst_27 {dimension_numbers = #tpu.dot_dimension_numbers<[1], [0], [0], [1], [0, 0, 1, 1], [], []>} : vector<16x32xbf16>, vector<32x8xbf16>, vector<16x8xf32> -> vector<16x8xf32>
    %46 = vector.extract_strided_slice %10 {offsets = [3, 0, 0], sizes = [1, 32, 8], strides = [1, 1, 1]} : vector<4x32x8xbf16> to vector<1x32x8xbf16>
    %47 = vector.shape_cast %46 : vector<1x32x8xbf16> to vector<32x8xbf16>
    %cst_28 = arith.constant dense<0.000000e+00> : vector<16x8xf32>
    %48 = tpu.matmul %4, %47, %cst_28 {dimension_numbers = #tpu.dot_dimension_numbers<[1], [0], [0], [1], [0, 0, 1, 1], [], []>} : vector<16x32xbf16>, vector<32x8xbf16>, vector<16x8xf32> -> vector<16x8xf32>
    %49 = vector.shape_cast %15 : vector<16x8xf32> to vector<1x16x8xf32>
    %50 = vector.shape_cast %24 : vector<16x8xf32> to vector<1x16x8xf32>
    %51 = vector.shape_cast %33 : vector<16x8xf32> to vector<1x16x8xf32>
    %52 = vector.shape_cast %42 : vector<16x8xf32> to vector<1x16x8xf32>
    %53 = tpu.concatenate %49, %50, %51, %52 in 0 : vector<1x16x8xf32>, vector<1x16x8xf32>, vector<1x16x8xf32>, vector<1x16x8xf32> -> vector<4x16x8xf32>
    %54 = vector.shape_cast %53 : vector<4x16x8xf32> to vector<8x8x8xf32>
    %55 = vector.shape_cast %18 : vector<16x8xf32> to vector<1x16x8xf32>
    %56 = vector.shape_cast %27 : vector<16x8xf32> to vector<1x16x8xf32>
    %57 = vector.shape_cast %36 : vector<16x8xf32> to vector<1x16x8xf32>
    %58 = vector.shape_cast %45 : vector<16x8xf32> to vector<1x16x8xf32>
    %59 = tpu.concatenate %55, %56, %57, %58 in 0 : vector<1x16x8xf32>, vector<1x16x8xf32>, vector<1x16x8xf32>, vector<1x16x8xf32> -> vector<4x16x8xf32>
    %60 = vector.shape_cast %59 : vector<4x16x8xf32> to vector<8x8x8xf32>
    %61 = vector.shape_cast %21 : vector<16x8xf32> to vector<1x16x8xf32>
    %62 = vector.shape_cast %30 : vector<16x8xf32> to vector<1x16x8xf32>
    %63 = vector.shape_cast %39 : vector<16x8xf32> to vector<1x16x8xf32>
    %64 = vector.shape_cast %48 : vector<16x8xf32> to vector<1x16x8xf32>
    %65 = tpu.concatenate %61, %62, %63, %64 in 0 : vector<1x16x8xf32>, vector<1x16x8xf32>, vector<1x16x8xf32>, vector<1x16x8xf32> -> vector<4x16x8xf32>
    %66 = vector.shape_cast %65 : vector<4x16x8xf32> to vector<8x8x8xf32>
    %67 = arith.truncf %54 : vector<8x8x8xf32> to vector<8x8x8xbf16>
    %68 = arith.truncf %60 : vector<8x8x8xf32> to vector<8x8x8xbf16>
    "tpu.trace_start"() <{level = 10 : i32, message = "bqd,bkd->bqk"}> : () -> ()
    %cst_29 = arith.constant dense<0.000000e+00> : vector<8x8x8xf32>
    %69 = tpu.matmul %67, %68, %cst_29 {dimension_numbers = #tpu.dot_dimension_numbers<[2], [2], [1], [1], [0, 0, 0, 1, 1, 1], [0], [0]>} : vector<8x8x8xbf16>, vector<8x8x8xbf16>, vector<8x8x8xf32> -> vector<8x8x8xf32>
    "tpu.trace_stop"() : () -> ()
    %cst_30 = arith.constant dense<0xFF800000> : vector<8x8xf32>
    %70 = vector.multi_reduction <maximumf>, %69, %cst_30 [2] : vector<8x8x8xf32> to vector<8x8xf32>
    %71 = vector.shape_cast %70 : vector<8x8xf32> to vector<8x8x1xf32>
    %72 = vector.broadcast %71 : vector<8x8x1xf32> to vector<8x8x8xf32>
    %73 = arith.subf %69, %72 : vector<8x8x8xf32>
    %74 = math.exp %73 : vector<8x8x8xf32>
    %cst_31 = arith.constant dense<0.000000e+00> : vector<8x8xf32>
    %75 = vector.multi_reduction <add>, %74, %cst_31 [2] : vector<8x8x8xf32> to vector<8x8xf32>
    %76 = vector.shape_cast %75 : vector<8x8xf32> to vector<8x8x1xf32>
    %77 = tpu.reciprocal %76 {approx = true} : vector<8x8x1xf32> -> vector<8x8x1xf32>
    %78 = vector.broadcast %77 : vector<8x8x1xf32> to vector<8x8x8xf32>
    %79 = arith.mulf %74, %78 : vector<8x8x8xf32>
    %80 = arith.truncf %79 : vector<8x8x8xf32> to vector<8x8x8xbf16>
    %81 = arith.truncf %66 : vector<8x8x8xf32> to vector<8x8x8xbf16>
    "tpu.trace_start"() <{level = 10 : i32, message = "bqk,bkd->bqd"}> : () -> ()
    %cst_32 = arith.constant dense<0.000000e+00> : vector<8x8x8xf32>
    %82 = tpu.matmul %80, %81, %cst_32 {dimension_numbers = #tpu.dot_dimension_numbers<[2], [1], [1], [2], [0, 0, 0, 1, 1, 2], [0], [0]>} : vector<8x8x8xbf16>, vector<8x8x8xbf16>, vector<8x8x8xf32> -> vector<8x8x8xf32>
    "tpu.trace_stop"() : () -> ()
    %83 = vector.shape_cast %82 : vector<8x8x8xf32> to vector<4x16x8xf32>
    %84 = arith.truncf %83 : vector<4x16x8xf32> to vector<4x16x8xbf16>
    %85 = vector.extract_strided_slice %84 {offsets = [0, 0, 0], sizes = [1, 16, 8], strides = [1, 1, 1]} : vector<4x16x8xbf16> to vector<1x16x8xbf16>
    %86 = vector.shape_cast %85 : vector<1x16x8xbf16> to vector<16x8xbf16>
    %87 = vector.extract_strided_slice %12 {offsets = [0, 0, 0], sizes = [1, 8, 32], strides = [1, 1, 1]} : vector<4x8x32xbf16> to vector<1x8x32xbf16>
    %88 = vector.shape_cast %87 : vector<1x8x32xbf16> to vector<8x32xbf16>
    %cst_33 = arith.constant dense<0.000000e+00> : vector<16x32xf32>
    %89 = tpu.matmul %86, %88, %cst_33 {dimension_numbers = #tpu.dot_dimension_numbers<[1], [0], [0], [1], [0, 0, 1, 1], [], []>} : vector<16x8xbf16>, vector<8x32xbf16>, vector<16x32xf32> -> vector<16x32xf32>
    %90 = vector.extract_strided_slice %84 {offsets = [1, 0, 0], sizes = [1, 16, 8], strides = [1, 1, 1]} : vector<4x16x8xbf16> to vector<1x16x8xbf16>
    %91 = vector.shape_cast %90 : vector<1x16x8xbf16> to vector<16x8xbf16>
    %92 = vector.extract_strided_slice %12 {offsets = [1, 0, 0], sizes = [1, 8, 32], strides = [1, 1, 1]} : vector<4x8x32xbf16> to vector<1x8x32xbf16>
    %93 = vector.shape_cast %92 : vector<1x8x32xbf16> to vector<8x32xbf16>
    %cst_34 = arith.constant dense<0.000000e+00> : vector<16x32xf32>
    %94 = tpu.matmul %91, %93, %cst_34 {dimension_numbers = #tpu.dot_dimension_numbers<[1], [0], [0], [1], [0, 0, 1, 1], [], []>} : vector<16x8xbf16>, vector<8x32xbf16>, vector<16x32xf32> -> vector<16x32xf32>
    %95 = arith.addf %89, %94 : vector<16x32xf32>
    %96 = vector.extract_strided_slice %84 {offsets = [2, 0, 0], sizes = [1, 16, 8], strides = [1, 1, 1]} : vector<4x16x8xbf16> to vector<1x16x8xbf16>
    %97 = vector.shape_cast %96 : vector<1x16x8xbf16> to vector<16x8xbf16>
    %98 = vector.extract_strided_slice %12 {offsets = [2, 0, 0], sizes = [1, 8, 32], strides = [1, 1, 1]} : vector<4x8x32xbf16> to vector<1x8x32xbf16>
    %99 = vector.shape_cast %98 : vector<1x8x32xbf16> to vector<8x32xbf16>
    %cst_35 = arith.constant dense<0.000000e+00> : vector<16x32xf32>
    %100 = tpu.matmul %97, %99, %cst_35 {dimension_numbers = #tpu.dot_dimension_numbers<[1], [0], [0], [1], [0, 0, 1, 1], [], []>} : vector<16x8xbf16>, vector<8x32xbf16>, vector<16x32xf32> -> vector<16x32xf32>
    %101 = arith.addf %95, %100 : vector<16x32xf32>
    %102 = vector.extract_strided_slice %84 {offsets = [3, 0, 0], sizes = [1, 16, 8], strides = [1, 1, 1]} : vector<4x16x8xbf16> to vector<1x16x8xbf16>
    %103 = vector.shape_cast %102 : vector<1x16x8xbf16> to vector<16x8xbf16>
    %104 = vector.extract_strided_slice %12 {offsets = [3, 0, 0], sizes = [1, 8, 32], strides = [1, 1, 1]} : vector<4x8x32xbf16> to vector<1x8x32xbf16>
    %105 = vector.shape_cast %104 : vector<1x8x32xbf16> to vector<8x32xbf16>
    %cst_36 = arith.constant dense<0.000000e+00> : vector<16x32xf32>
    %106 = tpu.matmul %103, %105, %cst_36 {dimension_numbers = #tpu.dot_dimension_numbers<[1], [0], [0], [1], [0, 0, 1, 1], [], []>} : vector<16x8xbf16>, vector<8x32xbf16>, vector<16x32xf32> -> vector<16x32xf32>
    %107 = arith.addf %101, %106 : vector<16x32xf32>
    %c0_37 = arith.constant 0 : index
    %c0_38 = arith.constant 0 : index
    %c0_39 = arith.constant 0 : index
    %108 = vector.load %arg9[%c0_37, %c0_38, %c0_39] : memref<1x1x32xf32, #tpu.memory_space<vmem>>, vector<1x1x32xf32>
    %109 = vector.shape_cast %108 : vector<1x1x32xf32> to vector<1x32xf32>
    %110 = vector.broadcast %109 : vector<1x32xf32> to vector<16x32xf32>
    %111 = arith.addf %107, %110 : vector<16x32xf32>
    %112 = arith.addf %3, %111 : vector<16x32xf32>
    %c0_40 = arith.constant 0 : index
    %c0_41 = arith.constant 0 : index
    %c0_42 = arith.constant 0 : index
    %113 = vector.load %arg14[%c0_40, %c0_41, %c0_42] : memref<1x1x32xf32, #tpu.memory_space<vmem>>, vector<1x1x32xf32>
    %114 = vector.shape_cast %113 : vector<1x1x32xf32> to vector<1x32xf32>
    %c0_43 = arith.constant 0 : index
    %c0_44 = arith.constant 0 : index
    %c0_45 = arith.constant 0 : index
    %115 = vector.load %arg15[%c0_43, %c0_44, %c0_45] : memref<1x1x32xf32, #tpu.memory_space<vmem>>, vector<1x1x32xf32>
    %116 = vector.shape_cast %115 : vector<1x1x32xf32> to vector<1x32xf32>
    %cst_46 = arith.constant dense<0.000000e+00> : vector<16xf32>
    %117 = vector.multi_reduction <add>, %112, %cst_46 [1] : vector<16x32xf32> to vector<16xf32>
    %118 = vector.shape_cast %117 : vector<16xf32> to vector<16x1xf32>
    %cst_47 = arith.constant 3.200000e+01 : f32
    %119 = vector.broadcast %cst_47 : f32 to vector<16x1xf32>
    %120 = arith.divf %118, %119 : vector<16x1xf32>
    %121 = vector.broadcast %120 : vector<16x1xf32> to vector<16x32xf32>
    %122 = arith.subf %112, %121 : vector<16x32xf32>
    %123 = arith.mulf %122, %122 : vector<16x32xf32>
    %cst_48 = arith.constant dense<0.000000e+00> : vector<16xf32>
    %124 = vector.multi_reduction <add>, %123, %cst_48 [1] : vector<16x32xf32> to vector<16xf32>
    %125 = vector.shape_cast %124 : vector<16xf32> to vector<16x1xf32>
    %cst_49 = arith.constant 3.200000e+01 : f32
    %126 = vector.broadcast %cst_49 : f32 to vector<16x1xf32>
    %127 = arith.divf %125, %126 : vector<16x1xf32>
    %128 = vector.broadcast %120 : vector<16x1xf32> to vector<16x32xf32>
    %129 = arith.subf %112, %128 : vector<16x32xf32>
    %cst_50 = arith.constant 9.99999997E-7 : f32
    %130 = vector.broadcast %cst_50 : f32 to vector<16x1xf32>
    %131 = arith.addf %127, %130 : vector<16x1xf32>
    %132 = math.rsqrt %131 : vector<16x1xf32>
    %133 = vector.broadcast %132 : vector<16x1xf32> to vector<16x32xf32>
    %134 = arith.mulf %129, %133 : vector<16x32xf32>
    %135 = vector.broadcast %114 : vector<1x32xf32> to vector<16x32xf32>
    %136 = arith.mulf %134, %135 : vector<16x32xf32>
    %137 = vector.broadcast %116 : vector<1x32xf32> to vector<16x32xf32>
    %138 = arith.addf %136, %137 : vector<16x32xf32>
    %139 = arith.truncf %138 : vector<16x32xf32> to vector<16x32xbf16>
    %c0_51 = arith.constant 0 : index
    %c0_52 = arith.constant 0 : index
    %c0_53 = arith.constant 0 : index
    %140 = vector.load %arg10[%c0_51, %c0_52, %c0_53] : memref<1x32x64xbf16, #tpu.memory_space<vmem>>, vector<1x32x64xbf16>
    %141 = vector.shape_cast %140 : vector<1x32x64xbf16> to vector<32x64xbf16>
    %cst_54 = arith.constant dense<0.000000e+00> : vector<16x64xf32>
    %142 = tpu.matmul %139, %141, %cst_54 {dimension_numbers = #tpu.dot_dimension_numbers<[1], [0], [0], [1], [0, 0, 1, 1], [], []>} : vector<16x32xbf16>, vector<32x64xbf16>, vector<16x64xf32> -> vector<16x64xf32>
    %c0_55 = arith.constant 0 : index
    %c0_56 = arith.constant 0 : index
    %c0_57 = arith.constant 0 : index
    %143 = vector.load %arg11[%c0_55, %c0_56, %c0_57] : memref<1x1x64xf32, #tpu.memory_space<vmem>>, vector<1x1x64xf32>
    %144 = vector.shape_cast %143 : vector<1x1x64xf32> to vector<1x64xf32>
    %145 = vector.broadcast %144 : vector<1x64xf32> to vector<16x64xf32>
    %146 = arith.addf %142, %145 : vector<16x64xf32>
    %cst_58 = arith.constant 0.000000e+00 : f32
    %147 = vector.broadcast %cst_58 : f32 to vector<16x64xf32>
    %148 = arith.maximumf %146, %147 : vector<16x64xf32>
    %149 = arith.truncf %148 : vector<16x64xf32> to vector<16x64xbf16>
    %c0_59 = arith.constant 0 : index
    %c0_60 = arith.constant 0 : index
    %c0_61 = arith.constant 0 : index
    %150 = vector.load %arg12[%c0_59, %c0_60, %c0_61] : memref<1x64x32xbf16, #tpu.memory_space<vmem>>, vector<1x64x32xbf16>
    %151 = vector.shape_cast %150 : vector<1x64x32xbf16> to vector<64x32xbf16>
    %cst_62 = arith.constant dense<0.000000e+00> : vector<16x32xf32>
    %152 = tpu.matmul %149, %151, %cst_62 {dimension_numbers = #tpu.dot_dimension_numbers<[1], [0], [0], [1], [0, 0, 1, 1], [], []>} : vector<16x64xbf16>, vector<64x32xbf16>, vector<16x32xf32> -> vector<16x32xf32>
    %c0_63 = arith.constant 0 : index
    %c0_64 = arith.constant 0 : index
    %c0_65 = arith.constant 0 : index
    %153 = vector.load %arg13[%c0_63, %c0_64, %c0_65] : memref<1x1x32xf32, #tpu.memory_space<vmem>>, vector<1x1x32xf32>
    %154 = vector.shape_cast %153 : vector<1x1x32xf32> to vector<1x32xf32>
    %155 = vector.broadcast %154 : vector<1x32xf32> to vector<16x32xf32>
    %156 = arith.addf %152, %155 : vector<16x32xf32>
    %157 = arith.addf %138, %156 : vector<16x32xf32>
    %c0_66 = arith.constant 0 : index
    %c0_67 = arith.constant 0 : index
    %c0_68 = arith.constant 0 : index
    %158 = vector.load %arg16[%c0_66, %c0_67, %c0_68] : memref<1x1x32xf32, #tpu.memory_space<vmem>>, vector<1x1x32xf32>
    %159 = vector.shape_cast %158 : vector<1x1x32xf32> to vector<1x32xf32>
    %c0_69 = arith.constant 0 : index
    %c0_70 = arith.constant 0 : index
    %c0_71 = arith.constant 0 : index
    %160 = vector.load %arg17[%c0_69, %c0_70, %c0_71] : memref<1x1x32xf32, #tpu.memory_space<vmem>>, vector<1x1x32xf32>
    %161 = vector.shape_cast %160 : vector<1x1x32xf32> to vector<1x32xf32>
    %cst_72 = arith.constant dense<0.000000e+00> : vector<16xf32>
    %162 = vector.multi_reduction <add>, %157, %cst_72 [1] : vector<16x32xf32> to vector<16xf32>
    %163 = vector.shape_cast %162 : vector<16xf32> to vector<16x1xf32>
    %cst_73 = arith.constant 3.200000e+01 : f32
    %164 = vector.broadcast %cst_73 : f32 to vector<16x1xf32>
    %165 = arith.divf %163, %164 : vector<16x1xf32>
    %166 = vector.broadcast %165 : vector<16x1xf32> to vector<16x32xf32>
    %167 = arith.subf %157, %166 : vector<16x32xf32>
    %168 = arith.mulf %167, %167 : vector<16x32xf32>
    %cst_74 = arith.constant dense<0.000000e+00> : vector<16xf32>
    %169 = vector.multi_reduction <add>, %168, %cst_74 [1] : vector<16x32xf32> to vector<16xf32>
    %170 = vector.shape_cast %169 : vector<16xf32> to vector<16x1xf32>
    %cst_75 = arith.constant 3.200000e+01 : f32
    %171 = vector.broadcast %cst_75 : f32 to vector<16x1xf32>
    %172 = arith.divf %170, %171 : vector<16x1xf32>
    %173 = vector.broadcast %165 : vector<16x1xf32> to vector<16x32xf32>
    %174 = arith.subf %157, %173 : vector<16x32xf32>
    %cst_76 = arith.constant 9.99999997E-7 : f32
    %175 = vector.broadcast %cst_76 : f32 to vector<16x1xf32>
    %176 = arith.addf %172, %175 : vector<16x1xf32>
    %177 = math.rsqrt %176 : vector<16x1xf32>
    %178 = vector.broadcast %177 : vector<16x1xf32> to vector<16x32xf32>
    %179 = arith.mulf %174, %178 : vector<16x32xf32>
    %180 = vector.broadcast %159 : vector<1x32xf32> to vector<16x32xf32>
    %181 = arith.mulf %179, %180 : vector<16x32xf32>
    %182 = vector.broadcast %161 : vector<1x32xf32> to vector<16x32xf32>
    %183 = arith.addf %181, %182 : vector<16x32xf32>
    %c0_77 = arith.constant 0 : index
    %c0_78 = arith.constant 0 : index
    %184 = vector.load %arg19[%c0_77, %c0_78] : memref<16x32xf32, #tpu.memory_space<vmem>>, vector<16x32xf32>
    tpu.vector_store %arg19[%c0_77, %c0_78], %183 {strides = array<i32>} : memref<16x32xf32, #tpu.memory_space<vmem>>, vector<16x32xf32>,
    %c1_i32 = arith.constant 1 : i32
    %185 = arith.cmpi eq, %arg1, %c1_i32 : i32
    %186 = arith.extui %185 : i1 to i32
    %c0_i32_79 = arith.constant 0 : i32
    %187 = arith.cmpi ne, %186, %c0_i32_79 : i32
    scf.if %187 {
      %c0_80 = arith.constant 0 : index
      %c0_81 = arith.constant 0 : index
      %188 = vector.load %arg18[%c0_80, %c0_81] : memref<16x32xf32, #tpu.memory_space<vmem>>, vector<16x32xf32>
      tpu.vector_store %arg18[%c0_80, %c0_81], %183 {strides = array<i32>} : memref<16x32xf32, #tpu.memory_space<vmem>>, vector<16x32xf32>,
    } else {
    }
    return
  }
  func.func @transform_0(%arg0: i32, %arg1: i32) -> (i32, i32) {
    %c0_i32 = arith.constant 0 : i32
    %c0_i32_0 = arith.constant 0 : i32
    return %arg0, %c0_i32 : i32, i32
  }
  func.func @transform_1(%arg0: i32, %arg1: i32) -> (i32, i32) {
    %c0_i32 = arith.constant 0 : i32
    %c0_i32_0 = arith.constant 0 : i32
    %c0_i32_1 = arith.constant 0 : i32
    return %c0_i32, %c0_i32_0 : i32, i32
  }
  func.func @transform_2(%arg0: i32, %arg1: i32) -> (i32, i32) {
    %c0_i32 = arith.constant 0 : i32
    %c0_i32_0 = arith.constant 0 : i32
    %c0_i32_1 = arith.constant 0 : i32
    return %c0_i32, %c0_i32_0 : i32, i32
  }
  func.func @transform_3(%arg0: i32, %arg1: i32) -> (i32, i32, i32, i32) {
    %c0_i32 = arith.constant 0 : i32
    %c0_i32_0 = arith.constant 0 : i32
    %c0_i32_1 = arith.constant 0 : i32
    %c0_i32_2 = arith.constant 0 : i32
    return %arg1, %c0_i32, %c0_i32_0, %c0_i32_1 : i32, i32, i32, i32
  }
  func.func @transform_4(%arg0: i32, %arg1: i32) -> (i32, i32, i32, i32) {
    %c0_i32 = arith.constant 0 : i32
    %c0_i32_0 = arith.constant 0 : i32
    %c0_i32_1 = arith.constant 0 : i32
    %c0_i32_2 = arith.constant 0 : i32
    return %arg1, %c0_i32, %c0_i32_0, %c0_i32_1 : i32, i32, i32, i32
  }
  func.func @transform_5(%arg0: i32, %arg1: i32) -> (i32, i32, i32, i32) {
    %c0_i32 = arith.constant 0 : i32
    %c0_i32_0 = arith.constant 0 : i32
    %c0_i32_1 = arith.constant 0 : i32
    %c0_i32_2 = arith.constant 0 : i32
    return %arg1, %c0_i32, %c0_i32_0, %c0_i32_1 : i32, i32, i32, i32
  }
  func.func @transform_6(%arg0: i32, %arg1: i32) -> (i32, i32, i32, i32) {
    %c0_i32 = arith.constant 0 : i32
    %c0_i32_0 = arith.constant 0 : i32
    %c0_i32_1 = arith.constant 0 : i32
    %c0_i32_2 = arith.constant 0 : i32
    return %arg1, %c0_i32, %c0_i32_0, %c0_i32_1 : i32, i32, i32, i32
  }
  func.func @transform_7(%arg0: i32, %arg1: i32) -> (i32, i32, i32) {
    %c0_i32 = arith.constant 0 : i32
    %c0_i32_0 = arith.constant 0 : i32
    %c0_i32_1 = arith.constant 0 : i32
    return %arg1, %c0_i32, %c0_i32_0 : i32, i32, i32
  }
  func.func @transform_8(%arg0: i32, %arg1: i32) -> (i32, i32, i32) {
    %c0_i32 = arith.constant 0 : i32
    %c0_i32_0 = arith.constant 0 : i32
    %c0_i32_1 = arith.constant 0 : i32
    return %arg1, %c0_i32, %c0_i32_0 : i32, i32, i32
  }
  func.func @transform_9(%arg0: i32, %arg1: i32) -> (i32, i32, i32) {
    %c0_i32 = arith.constant 0 : i32
    %c0_i32_0 = arith.constant 0 : i32
    %c0_i32_1 = arith.constant 0 : i32
    return %arg1, %c0_i32, %c0_i32_0 : i32, i32, i32
  }
  func.func @transform_10(%arg0: i32, %arg1: i32) -> (i32, i32, i32) {
    %c0_i32 = arith.constant 0 : i32
    %c0_i32_0 = arith.constant 0 : i32
    %c0_i32_1 = arith.constant 0 : i32
    return %arg1, %c0_i32, %c0_i32_0 : i32, i32, i32
  }
  func.func @transform_11(%arg0: i32, %arg1: i32) -> (i32, i32, i32) {
    %c0_i32 = arith.constant 0 : i32
    %c0_i32_0 = arith.constant 0 : i32
    %c0_i32_1 = arith.constant 0 : i32
    return %arg1, %c0_i32, %c0_i32_0 : i32, i32, i32
  }
  func.func @transform_12(%arg0: i32, %arg1: i32) -> (i32, i32, i32) {
    %c0_i32 = arith.constant 0 : i32
    %c0_i32_0 = arith.constant 0 : i32
    %c0_i32_1 = arith.constant 0 : i32
    return %arg1, %c0_i32, %c0_i32_0 : i32, i32, i32
  }
  func.func @transform_13(%arg0: i32, %arg1: i32) -> (i32, i32, i32) {
    %c0_i32 = arith.constant 0 : i32
    %c0_i32_0 = arith.constant 0 : i32
    %c0_i32_1 = arith.constant 0 : i32
    return %arg1, %c0_i32, %c0_i32_0 : i32, i32, i32
  }
  func.func @transform_14(%arg0: i32, %arg1: i32) -> (i32, i32, i32) {
    %c0_i32 = arith.constant 0 : i32
    %c0_i32_0 = arith.constant 0 : i32
    %c0_i32_1 = arith.constant 0 : i32
    return %arg1, %c0_i32, %c0_i32_0 : i32, i32, i32
  }
  func.func @transform_15(%arg0: i32, %arg1: i32) -> (i32, i32, i32) {
    %c0_i32 = arith.constant 0 : i32
    %c0_i32_0 = arith.constant 0 : i32
    %c0_i32_1 = arith.constant 0 : i32
    return %arg1, %c0_i32, %c0_i32_0 : i32, i32, i32
  }
  func.func @transform_16(%arg0: i32, %arg1: i32) -> (i32, i32) {
    %c0_i32 = arith.constant 0 : i32
    %c0_i32_0 = arith.constant 0 : i32
    return %arg0, %c0_i32 : i32, i32
  }
}

</mosaic_0001>

<bundles_post_ra>
// kernel: tpu_custom_call.1
= control target key start
LH: loop header
LB: loop body
LE: loop exit
PB: predicated region body
PF: predicated region fallthrough
CT: control target
= control target key end

     0   :  { %s4165_s0 = inlined_call_operand.vmem [shape: f32[16,32], index: 0, kind: input, shape index: {}]   ;;  %s4166_s1 = inlined_call_operand.vmem [shape: f32[1,32], index: 1, kind: input, shape index: {}]   ;;  %s4167_s2 = inlined_call_operand.vmem [shape: f32[1,32], index: 2, kind: input, shape index: {}]   ;;  %s4168_s3 = inlined_call_operand.vmem [shape: bf16[2,4,32,8], index: 3, kind: input, shape index: {}]   ;;  %s4169_s4 = inlined_call_operand.vmem [shape: bf16[2,4,32,8], index: 4, kind: input, shape index: {}]   ;;  %s4170_s5 = inlined_call_operand.vmem [shape: bf16[2,4,32,8], index: 5, kind: input, shape index: {}]   ;;  %s4171_s6 = inlined_call_operand.vmem [shape: bf16[2,4,8,32], index: 6, kind: input, shape index: {}]   ;;  %s4172_s7 = inlined_call_operand.vmem [shape: f32[2,1,32], index: 7, kind: input, shape index: {}]   ;;  %s4173_s8 = inlined_call_operand.vmem [shape: bf16[2,32,64], index: 8, kind: input, shape index: {}]   ;;  %s4174_s9 = inlined_call_operand.vmem [shape: f32[2,1,64], index: 9, kind: input, shape index: {}]   ;;  %s4175_s10 = inlined_call_operand.vmem [shape: bf16[2,64,32], index: 10, kind: input, shape index: {}]   ;;  %s4176_s11 = inlined_call_operand.vmem [shape: f32[2,1,32], index: 11, kind: input, shape index: {}]   ;;  %s4177_s12 = inlined_call_operand.vmem [shape: f32[2,1,32], index: 12, kind: input, shape index: {}]   ;;  %s4178_s13 = inlined_call_operand.vmem [shape: f32[2,1,32], index: 13, kind: input, shape index: {}]   ;;  %s4179_s14 = inlined_call_operand.vmem [shape: f32[2,1,32], index: 14, kind: input, shape index: {}]   ;;  %s4180_s15 = inlined_call_operand.vmem [shape: f32[2,1,32], index: 15, kind: input, shape index: {}]   ;;  %s4181_s16 = inlined_call_operand.hbm [shape: f32[16,32], index: 16, kind: output, shape index: {}]  }
   0x1   :  { %4186 = sst [smem:[#allocation9_spill]] %s4165_s0 }
   0x2   :  { %4187 = sst [smem:[#allocation10_spill]] %s4166_s1 }
   0x3   :  { %4188 = sst [smem:[#allocation11_spill]] %s4167_s2 }
   0x4   :  { %4189 = sst [smem:[#allocation12_spill]] %s4168_s3 }
   0x5   :  { %4190 = sst [smem:[#allocation13_spill]] %s4169_s4 }
   0x6   :  { %4191 = sst [smem:[#allocation14_spill]] %s4170_s5 }
   0x7   :  { %4192 = sst [smem:[#allocation15_spill]] %s4171_s6 }
   0x8   :  { %4193 = sst [smem:[#allocation16_spill]] %s4173_s8 }
   0x9   :  { %4194 = sst [smem:[#allocation17_spill]] %s4174_s9 }
   0xa   :  { %4195 = sst [smem:[#allocation18_spill]] %s4181_s16 }
   0xb   :  { %21 = vsyncpa [#allocation4], 0  ;;  %s3692_s21 = smov 0   ;;  %s3694_s22 = smov 0  }
   0xc   :  { %s3696_s23 = smov 0  }
   0xd LB: > { %4196 = sst [smem:[#allocation6_spill]] %s3596_s22  ;;  %s36_s25 = sadd.s32 1, %s3596_s22  ;;  %s3600_s23 = sphi %s3696_s23, %s27_s23   ;;  %s3596_s22 = sphi %s3694_s22, %s4219_s22   ;;  %s3592_s21 = sphi %s3692_s21, %s4218_s21  }
   0xe   : > { %4197 = sst [smem:[#allocation7_spill]] %s3600_s23  ;;  %p37_p0 = scmp.ge.s32.totalorder %s36_s25, 2 }
   0xf   : > { %p3019_p1 = scmp.ge.s32.totalorder %s3600_s23, 1  ;;  %p592_p2 = scmp.lt.s32.totalorder %s3600_s23, 3 }
  0x10   : > { %s4221_s25 = smov (%p37_p0, %s36_s25), 0 }
  0x11   : > { %4198 = sst [smem:[#allocation8_spill]] %s4221_s25  ;;  %p593_p3 = pnand %p3019_p1, %p592_p2 }
  0x12   : > { %p694_p4 = scmp.lt.s32.totalorder (!%p593_p3), %s3592_s21, 1  ;;  %s4199_s3 = sld [smem:[#allocation12_spill]] (!%p593_p3) }
  0x13   : > { %596 = sbr.rel (%p593_p3) target bundleno = 2690 (0xa82), region = 84  ;;  %s4200_s4 = sld [smem:[#allocation13_spill]] (!%p593_p3) }
  0x14   : > { %s4201_s5 = sld [smem:[#allocation14_spill]] (!%p593_p3)  ;;  %s4202_s6 = sld [smem:[#allocation15_spill]] (!%p593_p3) }
  0x15   : > { %s4203_s8 = sld [smem:[#allocation16_spill]] (!%p593_p3)  ;;  %p3032_p5 = scmp.ne.s32.totalorder (!%p593_p3), %s3592_s21, 0 }
  0x1a   : > { %s3715_s26 = scalar_select %p694_p4, %s3592_s21, 1 }
  0x1b   : > { %s4205_s22 = sld [smem:[#allocation9_spill]] (!%p3032_p5)  ;;  %vm755_vm0 = vcmask (!%p3032_p5), 261120   ;;  %s4207_s30 = sld [smem:[#allocation10_spill]] (!%p3032_p5) }
  0x1c   : > { %s3111_s27 = sshll.u32 %s3715_s26, 6  ;;  %s3114_s28 = sshll.u32 %s3715_s26, 4 }
  0x1d   : > { %s3722_s0 = scalar_lea.vmem %s4199_s3, %s3111_s27  ;;  %s3727_s19 = scalar_lea.vmem %s4200_s4, %s3111_s27 }
  0x1e   : > { %s3732_s25 = scalar_lea.vmem %s4201_s5, %s3111_s27  ;;  %s3737_s23 = scalar_lea.vmem %s4202_s6, %s3114_s28 }
  0x1f   : > { %s3746_s17 = scalar_lea.vmem %s4203_s8, %s3114_s28  ;;  %s3116_s27 = sshll.u32 %s3715_s26, 5 }
  0x20   : > { %s3756_s16 = scalar_lea.vmem %s4175_s10, %s3116_s27  ;;  %s735_s3 = scalar_lea.vmem %s4177_s12, %s3715_s26 }
  0x21   : > { %s738_s8 = scalar_lea.vmem %s4178_s13, %s3715_s26  ;;  %s741_s24 = scalar_lea.vmem %s4179_s14, %s3715_s26  ;;  %v751_v0 = vld [vmem:[%s4205_s22] sm:$0xff] (!%p3032_p5) }
  0x22   : > { %s744_s27 = scalar_lea.vmem %s4180_s15, %s3715_s26  ;;  %750 = sbr.rel (%p3032_p5) target bundleno = 352 (0x160), region = 88  ;;  %v756_v2 = vsel (!%p3032_p5), %vm755_vm0, %v751_v0, 0.0  ;;  %v3033_v21 = vld [vmem:[%s4207_s30] ss:$0 sm:$0xff] (!%p3032_p5) }
  0x23   : > { %s4206_s1 = smov (!%p3032_p5), %s4205_s22  ;;  %757 = vadd.xlane.f32.xlu0 (!%p3032_p5), %v756_v2  ;;  %s4208_s5 = sld [smem:[#allocation11_spill]] (!%p3032_p5) }
  0x24   : > { %v752_v1 = vld [vmem:[%s4206_s1 + $0x8] sm:$0xff] (!%p3032_p5) }
  0x25   : > { %v759_v3 = vsel (!%p3032_p5), %vm755_vm0, %v752_v1, 0.0 }
  0x27   : > { %760 = vadd.xlane.f32.xlu0 (!%p3032_p5), %v759_v3 }
  0x29   : > { %v3034_v23 = vld [vmem:[%s4208_s5] ss:$0 sm:$0xff] }
  0xb0   : > { %v758_v4 = vpop.xlane.xlu0 %757 }
  0xb1   : > { %v763_v5 = vmul.f32 0.03125, %v758_v4 }
  0xb3   : > { %v765_v6 = vsub.f32 %v751_v0, %v763_v5 }
  0xb4   : > { %v761_v7 = vpop.xlane.xlu0 %760 }
  0xb5   : > { %v764_v8 = vmul.f32 0.03125, %v761_v7  ;;  %v767_v9 = vmul.f32 %v765_v6, %v765_v6 }
  0xb7   : > { %v766_v10 = vsub.f32 %v752_v1, %v764_v8  ;;  %v769_v11 = vsel %vm755_vm0, %v767_v9, 0.0 }
  0xb8   : > { %770 = vadd.xlane.f32.xlu1 %v769_v11 }
  0xb9   : > { %v768_v12 = vmul.f32 %v766_v10, %v766_v10 }
  0xbb   : > { %v772_v13 = vsel %vm755_vm0, %v768_v12, 0.0 }
  0xbc   : > { %773 = vadd.xlane.f32.xlu1 %v772_v13 }
 0x145   : > { %v771_v14 = vpop.xlane.xlu1 %770 }
 0x146   : > { %v775_v15 = vmul.f32 0.03125, %v771_v14 }
 0x148   : > { %v777_v16 = vadd.f32 1e-12, %v775_v15 }
 0x149   : > { %v774_v17 = vpop.xlane.xlu1 %773 }
 0x14a   : > { %3472 = vrsqrt.f32 %v777_v16  ;;  %v776_v18 = vmul.f32 0.03125, %v774_v17 }
 0x14c   : > { %v778_v19 = vadd.f32 1e-12, %v776_v18 }
 0x14e   : > { %3474 = vrsqrt.f32 %v778_v19 }
 0x154   : > { %v3473_v20 = vpop.eup %3472 }
 0x155   : > { %v781_v22 = vmul.f32 %v3473_v20, %v765_v6 }
 0x157   : > { %v789_v24 = vmul.f32 %v3033_v21, %v781_v22 }
 0x158   : > { %v3475_v25 = vpop.eup %3474 }
 0x159   : > { %v797_v26 = vadd.f32 %v3034_v23, %v789_v24  ;;  %v782_v27 = vmul.f32 %v3475_v25, %v766_v10 }
 0x15b   : > { %799 = vst.msk [vmem:[#allocation2] sm:$0xff] %vm755_vm0, %v797_v26  ;;  %v790_v28 = vmul.f32 %v3033_v21, %v782_v27 }
 0x15d   : > { %v798_v29 = vadd.f32 %v3034_v23, %v790_v28 }
 0x15f   : > { %800 = vst.msk [vmem:[#allocation2 + $0x8] sm:$0xff] %vm755_vm0, %v798_v29 }
 0x160 PF: > { %v3476_v30 = vld [vmem:[%s3722_s0] sm:$0xff]   ;;  %v3602_v31 = vmov 0.0   ;;  %v3478_v33 = vld [vmem:[%s3722_s0 + $0x8] sm:$0xff]   ;;  %vm3603_vm1 = vmmov 0   ;;  %vm868_vm2 = vcmask 261120   ;;  %v3481_v39 = vld [vmem:[%s3722_s0 + $0x10] sm:$0xff]  }
 0x161   : > { %3201 = vmatprep.subr.bf16.mxu0 %v3602_v31  ;;  %3209 = vmatprep.subr.bf16.mxu1 %v3602_v31  ;;  %v3477_v32 = vld [vmem:[%s3727_s19] sm:$0xff]   ;;  %v3479_v34 = vld [vmem:[%s3727_s19 + $0x8] sm:$0xff]   ;;  %v3483_v41 = vld [vmem:[%s3722_s0 + $0x18] sm:$0xff]   ;;  %vm1512_vm3 = vcmask 64512   ;;  %vm1988_vm4 = vcmask 1043456   ;;  %s4210_s29 = sld [smem:[#allocation17_spill]] }
 0x162   : > { %3202 = vmatpush3.bf16.msra.mxu0 %v3476_v30  ;;  %3205 = vmatprep.mubr.msk.bf16.mxu0 %vm3603_vm1, %v3602_v31  ;;  %v801_v35 = vld [vmem:[#allocation2] sm:$0xff]  ;;  %v3482_v40 = vld [vmem:[%s3732_s25 + $0x8] sm:$0xff]   ;;  %v3484_v42 = vld [vmem:[%s3727_s19 + $0x10] sm:$0xff]   ;;  %vm2716_vm5 = vcmask 523264   ;;  %p3106_p6 = scmp.ne.s32.totalorder %s3592_s21, 1 }
 0x163   : > { %3210 = vmatpush3.bf16.msra.mxu1 %v3477_v32  ;;  %3203 = vmatprep.subr.bf16.mxu0 %v3602_v31  ;;  %v3480_v38 = vld [vmem:[%s3732_s25] sm:$0xff]   ;;  %v3485_v43 = vld [vmem:[%s3732_s25 + $0x10] sm:$0xff]   ;;  %v3486_v44 = vld [vmem:[%s3727_s19 + $0x18] sm:$0xff]  }
 0x164   : > { %3211 = vmatprep.subr.bf16.mxu1 %v3602_v31  ;;  %3213 = vmatprep.mubr.msk.bf16.mxu1 %vm3603_vm1, %v3602_v31  ;;  %v3487_v45 = vld [vmem:[%s3732_s25 + $0x18] sm:$0xff]   ;;  %v3488_v46 = vld [vmem:[%s3722_s0 + $0x20] sm:$0xff]   ;;  %v3490_v48 = vld [vmem:[%s3722_s0 + $0x28] sm:$0xff]  }
 0x165   : > { %v3489_v47 = vld [vmem:[%s3727_s19 + $0x20] sm:$0xff]   ;;  %v3491_v49 = vld [vmem:[%s3727_s19 + $0x28] sm:$0xff]   ;;  %v3496_v51 = vld [vmem:[%s3722_s0 + $0x30] sm:$0xff]  }
 0x166   : > { %v802_v36 = vld [vmem:[#allocation2 + $0x8] sm:$0xff]  ;;  %3204 = vmatpush3.bf16.msra.mxu0 %v3478_v33  ;;  %v3492_v50 = vld [vmem:[%s3732_s25 + $0x20] sm:$0xff]   ;;  %v3497_v53 = vld [vmem:[%s3722_s0 + $0x38] sm:$0xff]   ;;  %s4209_s0 = scalar_lea.vmem %s4172_s7, %s3715_s26 }
 0x167   : > { %v3809_v37 = vpack.c.bf16 %v802_v36, %v801_v35  ;;  %3212 = vmatpush3.bf16.msra.mxu1 %v3479_v34  ;;  %3217 = vmatprep.subr.bf16.mxu0 %v3602_v31  ;;  %v3493_v52 = vld [vmem:[%s3732_s25 + $0x28] sm:$0xff]   ;;  %v3494_v54 = vld [vmem:[%s3727_s19 + $0x30] sm:$0xff]   ;;  %v3495_v56 = vld [vmem:[%s3727_s19 + $0x38] sm:$0xff]   ;;  %s4211_s2 = scalar_lea.vmem %s4210_s29, %s3715_s26 }
 0x168   : > { %3225 = vmatprep.subr.bf16.mxu1 %v3602_v31  ;;  %v3498_v55 = vld [vmem:[%s3732_s25 + $0x30] sm:$0xff]   ;;  %v3499_v57 = vld [vmem:[%s3732_s25 + $0x38] sm:$0xff]  }
 0x169   : > { %3206 = vmatmul.mubr.msk.bf16.vlgmr.msra.gmra.mrb[0].mxu0 %vm868_vm2, %v3809_v37 }
 0x16a   : > { %3214 = vmatmul.mubr.msk.bf16.vlgmr.msra.gmra.mrb[0].mxu1 %vm868_vm2, %v3809_v37  ;;  %3218 = vmatpush3.bf16.msra.mxu0 %v3480_v38 }
 0x16b   : > { %3226 = vmatpush3.bf16.msra.mxu1 %v3481_v39  ;;  %3219 = vmatprep.subr.bf16.mxu0 %v3602_v31 }
 0x16c   : > { %3227 = vmatprep.subr.bf16.mxu1 %v3602_v31  ;;  %3221 = vmatprep.mubr.msk.bf16.mxu0 %vm3603_vm1, %v3602_v31 }
 0x16d   : > { %3229 = vmatprep.mubr.msk.bf16.mxu1 %vm3603_vm1, %v3602_v31 }
 0x16e   : > { %3220 = vmatpush3.bf16.msra.mxu0 %v3482_v40 }
 0x16f   : > { %3228 = vmatpush3.bf16.msra.mxu1 %v3483_v41  ;;  %3233 = vmatprep.subr.bf16.mxu0 %v3602_v31 }
 0x170   : > { %3241 = vmatprep.subr.bf16.mxu1 %v3602_v31 }
 0x171   : > { %3222 = vmatmul.mubr.msk.bf16.vlgmr.msra.gmra.mrb[4].mxu0 %vm868_vm2, %v3809_v37 }
 0x172   : > { %3230 = vmatmul.mubr.msk.bf16.vlgmr.msra.gmra.mrb[4].mxu1 %vm868_vm2, %v3809_v37  ;;  %3234 = vmatpush3.bf16.msra.mxu0 %v3484_v42 }
 0x173   : > { %3242 = vmatpush3.bf16.msra.mxu1 %v3485_v43  ;;  %3235 = vmatprep.subr.bf16.mxu0 %v3602_v31 }
 0x174   : > { %3243 = vmatprep.subr.bf16.mxu1 %v3602_v31  ;;  %3237 = vmatprep.mubr.msk.bf16.mxu0 %vm3603_vm1, %v3602_v31 }
 0x175   : > { %3245 = vmatprep.mubr.msk.bf16.mxu1 %vm3603_vm1, %v3602_v31 }
 0x176   : > { %3236 = vmatpush3.bf16.msra.mxu0 %v3486_v44 }
 0x177   : > { %3244 = vmatpush3.bf16.msra.mxu1 %v3487_v45  ;;  %3249 = vmatprep.subr.bf16.mxu0 %v3602_v31 }
 0x178   : > { %3257 = vmatprep.subr.bf16.mxu1 %v3602_v31 }
 0x179   : > { %3238 = vmatmul.mubr.msk.bf16.vlgmr.msra.gmra.mrb[8].mxu0 %vm868_vm2, %v3809_v37 }
 0x17a   : > { %3246 = vmatmul.mubr.msk.bf16.vlgmr.msra.gmra.mrb[8].mxu1 %vm868_vm2, %v3809_v37  ;;  %3250 = vmatpush3.bf16.msra.mxu0 %v3488_v46 }
 0x17b   : > { %3258 = vmatpush3.bf16.msra.mxu1 %v3489_v47  ;;  %3251 = vmatprep.subr.bf16.mxu0 %v3602_v31 }
 0x17c   : > { %3259 = vmatprep.subr.bf16.mxu1 %v3602_v31  ;;  %3253 = vmatprep.mubr.msk.bf16.mxu0 %vm3603_vm1, %v3602_v31 }
 0x17d   : > { %3261 = vmatprep.mubr.msk.bf16.mxu1 %vm3603_vm1, %v3602_v31 }
 0x17e   : > { %3252 = vmatpush3.bf16.msra.mxu0 %v3490_v48 }
 0x17f   : > { %3260 = vmatpush3.bf16.msra.mxu1 %v3491_v49  ;;  %3265 = vmatprep.subr.bf16.mxu0 %v3602_v31 }
 0x180   : > { %3273 = vmatprep.subr.bf16.mxu1 %v3602_v31 }
 0x181   : > { %3254 = vmatmul.mubr.msk.bf16.vlgmr.msra.gmra.mrb[12].mxu0 %vm868_vm2, %v3809_v37 }
 0x182   : > { %3262 = vmatmul.mubr.msk.bf16.vlgmr.msra.gmra.mrb[12].mxu1 %vm868_vm2, %v3809_v37  ;;  %3266 = vmatpush3.bf16.msra.mxu0 %v3492_v50 }
 0x183   : > { %3267 = vmatprep.subr.bf16.mxu0 %v3602_v31  ;;  %3269 = vmatprep.mubr.msk.bf16.mxu0 %vm3603_vm1, %v3602_v31 }
 0x184   : > { %3274 = vmatpush3.bf16.msra.mxu1 %v3496_v51  ;;  %3277 = vmatprep.mubr.msk.bf16.mxu1 %vm3603_vm1, %v3602_v31 }
 0x185   : > { %3275 = vmatprep.subr.bf16.mxu1 %v3602_v31 }
 0x186   : > { %3268 = vmatpush3.bf16.msra.mxu0 %v3493_v52 }
 0x187   : > { %3281 = vmatprep.subr.bf16.mxu0 %v3602_v31 }
 0x188   : > { %3276 = vmatpush3.bf16.msra.mxu1 %v3497_v53 }
 0x189   : > { %3270 = vmatmul.mubr.msk.bf16.vlgmr.msra.gmra.mrb[16].mxu0 %vm868_vm2, %v3809_v37  ;;  %3289 = vmatprep.subr.bf16.mxu1 %v3602_v31 }
 0x18a   : > { %3282 = vmatpush3.bf16.msra.mxu0 %v3494_v54  ;;  %3285 = vmatprep.mubr.msk.bf16.mxu0 %vm3603_vm1, %v3602_v31 }
 0x18b   : > { %3283 = vmatprep.subr.bf16.mxu0 %v3602_v31  ;;  %3278 = vmatmul.mubr.msk.bf16.vlgmr.msra.gmra.mrb[16].mxu1 %vm868_vm2, %v3809_v37 }
 0x18c   : > { %3290 = vmatpush3.bf16.msra.mxu1 %v3498_v55  ;;  %3293 = vmatprep.mubr.msk.bf16.mxu1 %vm3603_vm1, %v3602_v31 }
 0x18d   : > { %3291 = vmatprep.subr.bf16.mxu1 %v3602_v31 }
 0x18e   : > { %3284 = vmatpush3.bf16.msra.mxu0 %v3495_v56 }
 0x18f   : > { %3297 = vmatprep.subr.bf16.mxu0 %v3602_v31 }
 0x190   : > { %3292 = vmatpush3.bf16.msra.mxu1 %v3499_v57 }
 0x191   : > { %3286 = vmatmul.mubr.msk.bf16.vlgmr.msra.gmra.mrb[20].mxu0 %vm868_vm2, %v3809_v37  ;;  %3303 = vmatprep.subr.bf16.mxu1 %v3602_v31 }
 0x192   : > { %3299 = vmatprep.mubr.msk.bf16.mxu0 %vm3603_vm1, %v3602_v31 }
 0x193   : > { %3294 = vmatmul.mubr.msk.bf16.vlgmr.msra.gmra.mrb[20].mxu1 %vm868_vm2, %v3809_v37 }
 0x194   : > { %3305 = vmatprep.mubr.msk.bf16.mxu1 %vm3603_vm1, %v3602_v31 }
 0x23c   : > { %v906_v58 = vpop.f32.mrb[0].mxu0 }
 0x23d   : > { %v959_v59 = vpop.f32.mrb[0].mxu1  ;;  %v3207_v60 = vpop.f32.mrb[1].mxu0  ;;  %v1496_v9 = vpack.c.bf16 %v906_v58, %v906_v58 }
 0x23e   : > { %v1504_v61 = vpack.c.bf16 %v959_v59, %v959_v59  ;;  %v3215_v62 = vpop.f32.mrb[1].mxu1  ;;  %v909_v63 = vpop.f32.mrb[2].mxu0 }
 0x23f   : > { %v962_v0 = vpop.f32.mrb[2].mxu1  ;;  %v3208_v1 = vpop.f32.mrb[3].mxu0  ;;  %v1497_v14 = vpack.c.bf16 %v909_v63, %v909_v63 }
 0x240   : > { %v1517_v2 = vsel %vm1512_vm3, %v1504_v61, 0  ;;  %v1505_v3 = vpack.c.bf16 %v962_v0, %v962_v0  ;;  %v3216_v4 = vpop.f32.mrb[3].mxu1 }
 0x241   : > { %3298 = vmatpush3.bf16.xpose.msra.mxu0 %v1517_v2 }
 0x242   : > { %v1563_v5 = vsel %vm1512_vm3, %v1505_v3, 0  ;;  %3309 = vmatprep.subr.bf16.mxu0 %v3602_v31 }
 0x243   : > { %3304 = vmatpush3.bf16.xpose.msra.mxu1 %v1563_v5 }
 0x244   : > { %v3904_v6 = vpop.f32.mrb[4].mxu0  ;;  %3315 = vmatprep.subr.bf16.mxu1 %v3602_v31 }
 0x245   : > { %v3223_v7 = vpop.f32.mrb[5].mxu0  ;;  %v1065_v8 = vpop.f32.mrb[4].mxu1  ;;  %v1977_v1 = vpack.c.bf16 %v3904_v6, %v3904_v6 }
 0x246   : > { %v3907_v10 = vpop.f32.mrb[6].mxu0  ;;  %v3231_v11 = vpop.f32.mrb[5].mxu1  ;;  %v1498_v29 = vpack.c.bf16 %v1065_v8, %v1065_v8 }
 0x247   : > { %v3224_v12 = vpop.f32.mrb[7].mxu0  ;;  %v1068_v13 = vpop.f32.mrb[6].mxu1  ;;  %v1978_v3 = vpack.c.bf16 %v3907_v10, %v3907_v10  ;;  %v1990_v4 = vsel %vm1988_vm4, %v1977_v1, 0 }
 0x248   : > { %3300 = vmatmul.mubr.msk.bf16.vlgmr.msra.gmra.mrb[24].mxu0 %vm1512_vm3, %v1496_v9  ;;  %v3232_v15 = vpop.f32.mrb[7].mxu1  ;;  %v1499_v36 = vpack.c.bf16 %v1068_v13, %v1068_v13 }
 0x249   : > { %3311 = vmatprep.mubr.msk.bf16.mxu0 %vm3603_vm1, %v3602_v31  ;;  %v2036_v7 = vsel %vm1988_vm4, %v1978_v3, 0 }
 0x24a   : > { %3306 = vmatmul.mubr.msk.bf16.vlgmr.msra.gmra.mrb[24].mxu1 %vm1512_vm3, %v1497_v14 }
 0x24b   : > { %3317 = vmatprep.mubr.msk.bf16.mxu1 %vm3603_vm1, %v3602_v31 }
 0x24c   : > { %v1118_v16 = vpop.f32.mrb[8].mxu0 }
 0x24d   : > { %v1506_v17 = vpack.c.bf16 %v1118_v16, %v1118_v16  ;;  %v3239_v18 = vpop.f32.mrb[9].mxu0  ;;  %v3915_v19 = vpop.f32.mrb[8].mxu1 }
 0x24e   : > { %v1121_v20 = vpop.f32.mrb[10].mxu0  ;;  %v3247_v21 = vpop.f32.mrb[9].mxu1 }
 0x24f   : > { %v1609_v22 = vsel %vm1512_vm3, %v1506_v17, 0  ;;  %v1507_v23 = vpack.c.bf16 %v1121_v20, %v1121_v20  ;;  %v3240_v24 = vpop.f32.mrb[11].mxu0  ;;  %v3918_v25 = vpop.f32.mrb[10].mxu1 }
 0x250   : > { %3310 = vmatpush3.bf16.xpose.msra.mxu0 %v1609_v22  ;;  %v3248_v26 = vpop.f32.mrb[11].mxu1 }
 0x251   : > { %v1655_v27 = vsel %vm1512_vm3, %v1507_v23, 0  ;;  %3321 = vmatprep.subr.bf16.mxu0 %v3602_v31 }
 0x252   : > { %3316 = vmatpush3.bf16.xpose.msra.mxu1 %v1655_v27 }
 0x253   : > { %3327 = vmatprep.subr.bf16.mxu1 %v3602_v31 }
 0x254   : > { %v1224_v28 = vpop.f32.mrb[12].mxu0 }
 0x255   : > { %v1277_v30 = vpop.f32.mrb[12].mxu1  ;;  %v3255_v32 = vpop.f32.mrb[13].mxu0  ;;  %v1500_v45 = vpack.c.bf16 %v1224_v28, %v1224_v28 }
 0x256   : > { %v1508_v33 = vpack.c.bf16 %v1277_v30, %v1277_v30  ;;  %v3263_v34 = vpop.f32.mrb[13].mxu1  ;;  %v1227_v35 = vpop.f32.mrb[14].mxu0 }
 0x257   : > { %v1280_v37 = vpop.f32.mrb[14].mxu1  ;;  %v3256_v38 = vpop.f32.mrb[15].mxu0  ;;  %3312 = vmatmul.mubr.msk.bf16.vlgmr.msra.gmra.mrb[28].mxu0 %vm1512_vm3, %v1498_v29  ;;  %v1501_v50 = vpack.c.bf16 %v1227_v35, %v1227_v35 }
 0x258   : > { %v1701_v39 = vsel %vm1512_vm3, %v1508_v33, 0  ;;  %v1509_v40 = vpack.c.bf16 %v1280_v37, %v1280_v37  ;;  %v3264_v41 = vpop.f32.mrb[15].mxu1  ;;  %3323 = vmatprep.mubr.msk.bf16.mxu0 %vm3603_vm1, %v3602_v31 }
 0x259   : > { %3322 = vmatpush3.bf16.xpose.msra.mxu0 %v1701_v39  ;;  %3318 = vmatmul.mubr.msk.bf16.vlgmr.msra.gmra.mrb[28].mxu1 %vm1512_vm3, %v1499_v36 }
 0x25a   : > { %v1747_v42 = vsel %vm1512_vm3, %v1509_v40, 0  ;;  %3329 = vmatprep.mubr.msk.bf16.mxu1 %vm3603_vm1, %v3602_v31  ;;  %3333 = vmatprep.subr.bf16.mxu0 %v3602_v31 }
 0x25b   : > { %3328 = vmatpush3.bf16.xpose.msra.mxu1 %v1747_v42 }
 0x25c   : > { %v3932_v43 = vpop.f32.mrb[16].mxu0  ;;  %3339 = vmatprep.subr.bf16.mxu1 %v3602_v31 }
 0x25d   : > { %v3271_v44 = vpop.f32.mrb[17].mxu0 }
 0x25e   : > { %v3935_v46 = vpop.f32.mrb[18].mxu0  ;;  %v1383_v47 = vpop.f32.mrb[16].mxu1 }
 0x25f   : > { %v3272_v48 = vpop.f32.mrb[19].mxu0  ;;  %v3279_v49 = vpop.f32.mrb[17].mxu1  ;;  %v1502_v2 = vpack.c.bf16 %v1383_v47, %v1383_v47 }
 0x260   : > { %3324 = vmatmul.mubr.msk.bf16.vlgmr.msra.gmra.mrb[32].mxu0 %vm1512_vm3, %v1500_v45  ;;  %v1386_v51 = vpop.f32.mrb[18].mxu1 }
 0x261   : > { %v3280_v52 = vpop.f32.mrb[19].mxu1  ;;  %3335 = vmatprep.mubr.msk.bf16.mxu0 %vm3603_vm1, %v3602_v31  ;;  %v1503_v5 = vpack.c.bf16 %v1386_v51, %v1386_v51 }
 0x262   : > { %3330 = vmatmul.mubr.msk.bf16.vlgmr.msra.gmra.mrb[32].mxu1 %vm1512_vm3, %v1501_v50 }
 0x263   : > { %3341 = vmatprep.mubr.msk.bf16.mxu1 %vm3603_vm1, %v3602_v31 }
 0x264   : > { %v1436_v53 = vpop.f32.mrb[20].mxu0 }
 0x265   : > { %v1510_v54 = vpack.c.bf16 %v1436_v53, %v1436_v53  ;;  %v3287_v55 = vpop.f32.mrb[21].mxu0 }
 0x266   : > { %v1439_v56 = vpop.f32.mrb[22].mxu0  ;;  %v3943_v57 = vpop.f32.mrb[20].mxu1 }
 0x267   : > { %v1793_v58 = vsel %vm1512_vm3, %v1510_v54, 0  ;;  %v1511_v59 = vpack.c.bf16 %v1439_v56, %v1439_v56  ;;  %v3288_v60 = vpop.f32.mrb[23].mxu0  ;;  %v3295_v61 = vpop.f32.mrb[21].mxu1 }
 0x268   : > { %3334 = vmatpush3.bf16.xpose.msra.mxu0 %v1793_v58  ;;  %v3946_v62 = vpop.f32.mrb[22].mxu1 }
 0x269   : > { %v1839_v63 = vsel %vm1512_vm3, %v1511_v59, 0  ;;  %3345 = vmatprep.subr.bf16.mxu0 %v3602_v31  ;;  %v3296_v0 = vpop.f32.mrb[23].mxu1 }
 0x26a   : > { %3340 = vmatpush3.bf16.xpose.msra.mxu1 %v1839_v63 }
 0x26b   : > { %3351 = vmatprep.subr.bf16.mxu1 %v3602_v31 }
 0x26f   : > { %3336 = vmatmul.mubr.msk.bf16.vlgmr.msra.gmra.mrb[36].mxu0 %vm1512_vm3, %v1502_v2 }
 0x270   : > { %3346 = vmatpush3.bf16.msra.mxu0 %v1990_v4  ;;  %3347 = vmatprep.mubr.msk.bf16.mxu0 %vm3603_vm1, %v3602_v31 }
 0x271   : > { %3342 = vmatmul.mubr.msk.bf16.vlgmr.msra.gmra.mrb[36].mxu1 %vm1512_vm3, %v1503_v5  ;;  %3357 = vmatprep.subr.bf16.mxu0 %v3602_v31 }
 0x272   : > { %3352 = vmatpush3.bf16.msra.mxu1 %v2036_v7  ;;  %3353 = vmatprep.mubr.msk.bf16.mxu1 %vm3603_vm1, %v3602_v31 }
 0x273   : > { %3363 = vmatprep.subr.bf16.mxu1 %v3602_v31 }
 0x31b   : > { %v1553_v6 = vpop.f32.mrb[24].mxu0 }
 0x31c   : > { %v3301_v8 = vpop.f32.mrb[25].mxu0  ;;  %v1881_v9 = vsel %vm1512_vm3, %v1553_v6, -inf }
 0x31d   : > { %v1599_v10 = vpop.f32.mrb[24].mxu1  ;;  %1882 = vmax.xlane.f32.xlu0 %v1881_v9  ;;  %v1556_v11 = vpop.f32.mrb[26].mxu0 }
 0x31e   : > { %v3302_v12 = vpop.f32.mrb[27].mxu0  ;;  %v3307_v13 = vpop.f32.mrb[25].mxu1  ;;  %v1884_v16 = vsel %vm1512_vm3, %v1599_v10, -inf }
 0x31f   : > { %v1602_v14 = vpop.f32.mrb[26].mxu1 }
 0x320   : > { %v3308_v15 = vpop.f32.mrb[27].mxu1 }
 0x321   : > { %1885 = vmax.xlane.f32.xlu0 %v1884_v16 }
 0x32a   : > { %v1645_v17 = vpop.f32.mrb[28].mxu0 }
 0x32b   : > { %v3313_v18 = vpop.f32.mrb[29].mxu0  ;;  %v1887_v20 = vsel %vm1512_vm3, %v1645_v17, -inf }
 0x32c   : > { %v1691_v21 = vpop.f32.mrb[28].mxu1  ;;  %1888 = vmax.xlane.f32.xlu1 %v1887_v20  ;;  %v1648_v22 = vpop.f32.mrb[30].mxu0 }
 0x32d   : > { %v3314_v23 = vpop.f32.mrb[31].mxu0  ;;  %v3319_v24 = vpop.f32.mrb[29].mxu1  ;;  %v1890_v28 = vsel %vm1512_vm3, %v1691_v21, -inf }
 0x32e   : > { %v1694_v26 = vpop.f32.mrb[30].mxu1 }
 0x32f   : > { %v3320_v27 = vpop.f32.mrb[31].mxu1 }
 0x330   : > { %1891 = vmax.xlane.f32.xlu1 %v1890_v28 }
 0x333   : > { %v1737_v29 = vpop.f32.mrb[32].mxu0 }
 0x334   : > { %v3325_v30 = vpop.f32.mrb[33].mxu0  ;;  %v1893_v32 = vsel %vm1512_vm3, %v1737_v29, -inf }
 0x335   : > { %v1783_v33 = vpop.f32.mrb[32].mxu1  ;;  %1894 = vmax.xlane.f32.xlu0 %v1893_v32  ;;  %v1740_v34 = vpop.f32.mrb[34].mxu0 }
 0x336   : > { %v3326_v35 = vpop.f32.mrb[35].mxu0  ;;  %v3331_v36 = vpop.f32.mrb[33].mxu1  ;;  %v1896_v37 = vsel %vm1512_vm3, %v1783_v33, -inf }
 0x337   : > { %v1786_v38 = vpop.f32.mrb[34].mxu1  ;;  %1897 = vmax.xlane.f32.xlu1 %v1896_v37  ;;  %v1979_v36 = vpack.c.bf16 %v3915_v19, %v3915_v19 }
 0x338   : > { %v3332_v39 = vpop.f32.mrb[35].mxu1 }
 0x342   : > { %v1829_v40 = vpop.f32.mrb[36].mxu0 }
 0x343   : > { %v3337_v41 = vpop.f32.mrb[37].mxu0  ;;  %v1899_v42 = vsel %vm1512_vm3, %v1829_v40, -inf }
 0x344   : > { %v1875_v44 = vpop.f32.mrb[36].mxu1  ;;  %1900 = vmax.xlane.f32.xlu0 %v1899_v42  ;;  %v1832_v45 = vpop.f32.mrb[38].mxu0  ;;  %v2082_v41 = vsel %vm1988_vm4, %v1979_v36, 0  ;;  %v1980_v42 = vpack.c.bf16 %v3918_v25, %v3918_v25 }
 0x345   : > { %v3338_v47 = vpop.f32.mrb[39].mxu0  ;;  %v3343_v48 = vpop.f32.mrb[37].mxu1  ;;  %v1902_v49 = vsel %vm1512_vm3, %v1875_v44, -inf }
 0x346   : > { %v1878_v50 = vpop.f32.mrb[38].mxu1  ;;  %1903 = vmax.xlane.f32.xlu1 %v1902_v49  ;;  %v2128_v47 = vsel %vm1988_vm4, %v1980_v42, 0 }
 0x347   : > { %v3344_v51 = vpop.f32.mrb[39].mxu1  ;;  %v1981_v50 = vpack.c.bf16 %v3932_v43, %v3932_v43 }
 0x3aa   : > { %v1883_v52 = vpop.xlane.xlu0 %1882 }
 0x3ab   : > { %v1905_v53 = vsub.f32 %v1553_v6, %v1883_v52 }
 0x3ad   : > { %v1913_v54 = vmul.f32 1.442695, %v1905_v53 }
 0x3ae   : > { %v1886_v55 = vpop.xlane.xlu0 %1885 }
 0x3af   : > { %3506 = vpow2.f32 %v1913_v54  ;;  %v1906_v56 = vsub.f32 %v1599_v10, %v1886_v55  ;;  %v2174_v54 = vsel %vm1988_vm4, %v1981_v50, 0  ;;  %v1982_v55 = vpack.c.bf16 %v3935_v46, %v3935_v46 }
 0x3b1   : > { %v1915_v58 = vmul.f32 1.442695, %v1906_v56 }
 0x3b3   : > { %3508 = vpow2.f32 %v1915_v58 }
 0x3b9   : > { %v3507_v59 = vpop.eup %3506  ;;  %v1889_v60 = vpop.xlane.xlu1 %1888 }
 0x3ba   : > { %v1907_v61 = vsub.f32 %v1645_v17, %v1889_v60  ;;  %v1929_v63 = vsel %vm1512_vm3, %v3507_v59, 0.0  ;;  %v1983_v60 = vpack.c.bf16 %v3943_v57, %v3943_v57 }
 0x3bb   : > { %1930 = vadd.xlane.f32.xlu0 %v1929_v63 }
 0x3bc   : > { %v1917_v0 = vmul.f32 1.442695, %v1907_v61 }
 0x3bd   : > { %v3509_v1 = vpop.eup %3508  ;;  %v1892_v2 = vpop.xlane.xlu1 %1891 }
 0x3be   : > { %3510 = vpow2.f32 %v1917_v0  ;;  %v1908_v3 = vsub.f32 %v1691_v21, %v1892_v2  ;;  %v1932_v4 = vsel %vm1512_vm3, %v3509_v1, 0.0 }
 0x3bf   : > { %1933 = vadd.xlane.f32.xlu1 %v1932_v4 }
 0x3c0   : > { %v1919_v5 = vmul.f32 1.442695, %v1908_v3  ;;  %v2266_v3 = vsel %vm1988_vm4, %v1983_v60, 0 }
 0x3c2   : > { %3512 = vpow2.f32 %v1919_v5  ;;  %v1895_v7 = vpop.xlane.xlu0 %1894 }
 0x3c3   : > { %v1909_v6 = vsub.f32 %v1737_v29, %v1895_v7 }
 0x3c4   : > { %v1898_v8 = vpop.xlane.xlu1 %1897 }
 0x3c5   : > { %v1921_v9 = vmul.f32 1.442695, %v1909_v6  ;;  %v1910_v10 = vsub.f32 %v1783_v33, %v1898_v8 }
 0x3c7   : > { %3514 = vpow2.f32 %v1921_v9  ;;  %v1923_v11 = vmul.f32 1.442695, %v1910_v10 }
 0x3c8   : > { %v3511_v12 = vpop.eup %3510 }
 0x3c9   : > { %3516 = vpow2.f32 %v1923_v11  ;;  %v1935_v13 = vsel %vm1512_vm3, %v3511_v12, 0.0  ;;  %v852_v11 = vld [vmem:[%s3737_s23] sm:$0xf] }
 0x3ca   : > { %1936 = vadd.xlane.f32.xlu0 %v1935_v13  ;;  %v853_v13 = vld [vmem:[%s3737_s23 + $0x4] sm:$0xf] }
 0x3cc   : > { %v3513_v14 = vpop.eup %3512 }
 0x3cd   : > { %v1938_v15 = vsel %vm1512_vm3, %v3513_v14, 0.0 }
 0x3ce   : > { %1939 = vadd.xlane.f32.xlu1 %v1938_v15 }
 0x3d1   : > { %v3977_v16 = vpop.eup %3514  ;;  %v1901_v17 = vpop.xlane.xlu0 %1900 }
 0x3d2   : > { %v1911_v18 = vsub.f32 %v1829_v40, %v1901_v17  ;;  %v1941_v20 = vsel %vm1512_vm3, %v3977_v16, 0.0 }
 0x3d3   : > { %v3981_v21 = vpop.eup %3516  ;;  %1942 = vadd.xlane.f32.xlu0 %v1941_v20  ;;  %v1904_v22 = vpop.xlane.xlu1 %1903 }
 0x3d4   : > { %v1925_v23 = vmul.f32 1.442695, %v1911_v18  ;;  %v1912_v24 = vsub.f32 %v1875_v44, %v1904_v22  ;;  %v1944_v26 = vsel %vm1512_vm3, %v3981_v21, 0.0  ;;  %v855_v18 = vld [vmem:[%s3737_s23 + $0xc] sm:$0xf] }
 0x3d5   : > { %1945 = vadd.xlane.f32.xlu1 %v1944_v26 }
 0x3d6   : > { %3518 = vpow2.f32 %v1925_v23  ;;  %v1927_v27 = vmul.f32 1.442695, %v1912_v24  ;;  %v2505_v24 = vsel %vm1988_vm4, %v855_v18, 0 }
 0x3d8   : > { %3520 = vpow2.f32 %v1927_v27 }
 0x3e0   : > { %v3985_v28 = vpop.eup %3518 }
 0x3e1   : > { %v1947_v29 = vsel %vm1512_vm3, %v3985_v28, 0.0 }
 0x3e2   : > { %v3989_v30 = vpop.eup %3520  ;;  %1948 = vadd.xlane.f32.xlu0 %v1947_v29 }
 0x3e3   : > { %v1950_v32 = vsel %vm1512_vm3, %v3989_v30, 0.0 }
 0x3e4   : > { %1951 = vadd.xlane.f32.xlu1 %v1950_v32  ;;  %v854_v32 = vld [vmem:[%s3737_s23 + $0x8] sm:$0xf] }
 0x448   : > { %v1931_v33 = vpop.xlane.xlu0 %1930 }
 0x449   : > { %3522 = vrcp.f32 %v1931_v33 }
 0x44c   : > { %v1934_v34 = vpop.xlane.xlu1 %1933 }
 0x44d   : > { %3524 = vrcp.f32 %v1934_v34 }
 0x453   : > { %v3523_v35 = vpop.eup %3522 }
 0x454   : > { %v1961_v37 = vmul.f32 %v3523_v35, %v3507_v59  ;;  %v2220_v59 = vsel %vm1988_vm4, %v1982_v55, 0 }
 0x456   : > { %v1969_v38 = vpack.c.bf16 %v1961_v37, %v1961_v37  ;;  %v2456_v37 = vsel %vm1988_vm4, %v854_v32, 0 }
 0x457   : > { %v3525_v39 = vpop.eup %3524  ;;  %v1937_v40 = vpop.xlane.xlu0 %1936 }
 0x458   : > { %v1962_v44 = vmul.f32 %v3525_v39, %v3509_v1  ;;  %3348 = vmatmul.mubr.msk.bf16.vlgmr.msra.gmra.mrb[40].mxu0 %vm1512_vm3, %v1969_v38  ;;  %3526 = vrcp.f32 %v1937_v40  ;;  %v1984_v1 = vpack.c.bf16 %v3946_v62, %v3946_v62 }
 0x459   : > { %3358 = vmatpush3.bf16.msra.mxu0 %v2082_v41  ;;  %3359 = vmatprep.mubr.msk.bf16.mxu0 %vm3603_vm1, %v3602_v31 }
 0x45a   : > { %v1970_v45 = vpack.c.bf16 %v1962_v44, %v1962_v44  ;;  %3369 = vmatprep.subr.bf16.mxu0 %v3602_v31  ;;  %v2312_v5 = vsel %vm1988_vm4, %v1984_v1, 0 }
 0x45b   : > { %v1940_v19 = vpop.xlane.xlu1 %1939 }
 0x45c   : > { %3354 = vmatmul.mubr.msk.bf16.vlgmr.msra.gmra.mrb[40].mxu1 %vm1512_vm3, %v1970_v45  ;;  %3528 = vrcp.f32 %v1940_v19 }
 0x45d   : > { %3364 = vmatpush3.bf16.msra.mxu1 %v2128_v47  ;;  %3365 = vmatprep.mubr.msk.bf16.mxu1 %vm3603_vm1, %v3602_v31 }
 0x45e   : > { %3375 = vmatprep.subr.bf16.mxu1 %v3602_v31 }
 0x460   : > { %v1943_v25 = vpop.xlane.xlu0 %1942 }
 0x461   : > { %3530 = vrcp.f32 %v1943_v25 }
 0x462   : > { %v3527_v48 = vpop.eup %3526  ;;  %v1946_v49 = vpop.xlane.xlu1 %1945 }
 0x463   : > { %v1963_v51 = vmul.f32 %v3527_v48, %v3511_v12  ;;  %3532 = vrcp.f32 %v1946_v49  ;;  %v2409_v12 = vsel %vm1988_vm4, %v852_v11, 0 }
 0x465   : > { %v1971_v52 = vpack.c.bf16 %v1963_v51, %v1963_v51 }
 0x466   : > { %v3529_v53 = vpop.eup %3528 }
 0x467   : > { %v1964_v56 = vmul.f32 %v3529_v53, %v3513_v14  ;;  %3360 = vmatmul.mubr.msk.bf16.vlgmr.msra.gmra.mrb[44].mxu0 %vm1512_vm3, %v1971_v52  ;;  %v2362_v14 = vsel %vm1988_vm4, %v853_v13, 0 }
 0x468   : > { %3370 = vmatpush3.bf16.msra.mxu0 %v2174_v54  ;;  %3371 = vmatprep.mubr.msk.bf16.mxu0 %vm3603_vm1, %v3602_v31 }
 0x469   : > { %v1972_v58 = vpack.c.bf16 %v1964_v56, %v1964_v56  ;;  %3381 = vmatprep.subr.bf16.mxu0 %v3602_v31 }
 0x46b   : > { %v3531_v43 = vpop.eup %3530  ;;  %3366 = vmatmul.mubr.msk.bf16.vlgmr.msra.gmra.mrb[44].mxu1 %vm1512_vm3, %v1972_v58 }
 0x46c   : > { %v1965_v46 = vmul.f32 %v3531_v43, %v3977_v16  ;;  %3376 = vmatpush3.bf16.msra.mxu1 %v2220_v59  ;;  %3377 = vmatprep.mubr.msk.bf16.mxu1 %vm3603_vm1, %v3602_v31 }
 0x46d   : > { %v3533_v61 = vpop.eup %3532  ;;  %3387 = vmatprep.subr.bf16.mxu1 %v3602_v31 }
 0x46e   : > { %v1966_v63 = vmul.f32 %v3533_v61, %v3981_v21  ;;  %v1973_v0 = vpack.c.bf16 %v1965_v46, %v1965_v46 }
 0x46f   : > { %v1949_v2 = vpop.xlane.xlu0 %1948 }
 0x470   : > { %3372 = vmatmul.mubr.msk.bf16.vlgmr.msra.gmra.mrb[48].mxu0 %vm1512_vm3, %v1973_v0  ;;  %3534 = vrcp.f32 %v1949_v2  ;;  %v1974_v4 = vpack.c.bf16 %v1966_v63, %v1966_v63 }
 0x471   : > { %3382 = vmatpush3.bf16.msra.mxu0 %v2266_v3  ;;  %v1952_v57 = vpop.xlane.xlu1 %1951  ;;  %3383 = vmatprep.mubr.msk.bf16.mxu0 %vm3603_vm1, %v3602_v31 }
 0x472   : > { %3536 = vrcp.f32 %v1952_v57  ;;  %3393 = vmatprep.subr.bf16.mxu0 %v3602_v31 }
 0x473   : > { %3378 = vmatmul.mubr.msk.bf16.vlgmr.msra.gmra.mrb[48].mxu1 %vm1512_vm3, %v1974_v4 }
 0x474   : > { %3388 = vmatpush3.bf16.msra.mxu1 %v2312_v5  ;;  %3389 = vmatprep.mubr.msk.bf16.mxu1 %vm3603_vm1, %v3602_v31 }
 0x475   : > { %3399 = vmatprep.subr.bf16.mxu1 %v3602_v31 }
 0x47a   : > { %v3535_v62 = vpop.eup %3534 }
 0x47b   : > { %v1967_v7 = vmul.f32 %v3535_v62, %v3985_v28 }
 0x47c   : > { %v3537_v6 = vpop.eup %3536 }
 0x47d   : > { %v1968_v8 = vmul.f32 %v3537_v6, %v3989_v30  ;;  %v1975_v9 = vpack.c.bf16 %v1967_v7, %v1967_v7 }
 0x47f   : > { %3384 = vmatmul.mubr.msk.bf16.vlgmr.msra.gmra.mrb[52].mxu0 %vm1512_vm3, %v1975_v9  ;;  %v1976_v10 = vpack.c.bf16 %v1968_v8, %v1968_v8  ;;  %v3091_v9 = vld [vmem:[%s4209_s0] ss:$0 sm:$0xff] }
 0x480   : > { %3395 = vmatprep.mubr.msk.bf16.mxu0 %vm3603_vm1, %v3602_v31  ;;  %3394 = vmatpush3.bf16.msra.mxu0 %v2362_v14 }
 0x481   : > { %3390 = vmatmul.mubr.msk.bf16.vlgmr.msra.gmra.mrb[52].mxu1 %vm1512_vm3, %v1976_v10  ;;  %3405 = vmatprep.subr.bf16.mxu0 %v3602_v31 }
 0x482   : > { %3401 = vmatprep.mubr.msk.bf16.mxu1 %vm3603_vm1, %v3602_v31  ;;  %3400 = vmatpush3.bf16.msra.mxu1 %v2409_v12 }
 0x483   : > { %3411 = vmatprep.subr.bf16.mxu1 %v3602_v31 }
 0x52b   : > { %v2026_v15 = vpop.f32.mrb[40].mxu0 }
 0x52c   : > { %v3349_v16 = vpop.f32.mrb[41].mxu0 }
 0x52d   : > { %v2029_v17 = vpop.f32.mrb[42].mxu0 }
 0x52e   : > { %v3350_v20 = vpop.f32.mrb[43].mxu0  ;;  %v3546_v17 = vld [vmem:[#allocation2] sm:$0xff] }
 0x52f   : > { %v2072_v21 = vpop.f32.mrb[40].mxu1 }
 0x530   : > { %v2354_v22 = vpack.c.bf16 %v2072_v21, %v2026_v15  ;;  %v3355_v23 = vpop.f32.mrb[41].mxu1  ;;  %v3547_v21 = vld [vmem:[#allocation2 + $0x8] sm:$0xff] }
 0x531   : > { %v2075_v26 = vpop.f32.mrb[42].mxu1 }
 0x532   : > { %v3356_v27 = vpop.f32.mrb[43].mxu1  ;;  %3402 = vmatmul.mubr.msk.bf16.vlgmr.msra.gmra.mrb[56].mxu1 %vm1512_vm3, %v2354_v22 }
 0x533   : > { %3412 = vmatpush3.bf16.msra.mxu1 %v2505_v24  ;;  %3413 = vmatprep.mubr.msk.bf16.mxu1 %vm3603_vm1, %v3602_v31 }
 0x534   : > { %3425 = vmatprep.subr.bf16.mxu1 %v3602_v31 }
 0x53a   : > { %v2118_v28 = vpop.f32.mrb[44].mxu0 }
 0x53b   : > { %v3361_v29 = vpop.f32.mrb[45].mxu0 }
 0x53c   : > { %v2121_v30 = vpop.f32.mrb[46].mxu0 }
 0x53d   : > { %v3362_v33 = vpop.f32.mrb[47].mxu0 }
 0x53e   : > { %v2164_v34 = vpop.f32.mrb[44].mxu1 }
 0x53f   : > { %v2355_v35 = vpack.c.bf16 %v2164_v34, %v2118_v28  ;;  %v3367_v36 = vpop.f32.mrb[45].mxu1 }
 0x540   : > { %v2167_v38 = vpop.f32.mrb[46].mxu1  ;;  %v3500_v36 = vld [vmem:[%s3746_s17] sm:$0xff]  }
 0x541   : > { %v3368_v39 = vpop.f32.mrb[47].mxu1  ;;  %3396 = vmatmul.mubr.msk.bf16.vlgmr.msra.gmra.mrb[56].mxu0 %vm1512_vm3, %v2355_v35  ;;  %v3502_v38 = vld [vmem:[%s3756_s16] sm:$0xff]  }
 0x542   : > { %3406 = vmatpush3.bf16.msra.mxu0 %v2456_v37  ;;  %3407 = vmatprep.mubr.msk.bf16.mxu0 %vm3603_vm1, %v3602_v31  ;;  %v3501_v37 = vld [vmem:[%s3746_s17 + $0x8] sm:$0xff]  }
 0x543   : > { %v2210_v40 = vpop.f32.mrb[48].mxu0  ;;  %3417 = vmatprep.subr.bf16.mxu0 %v3602_v31  ;;  %v3503_v39 = vld [vmem:[%s3756_s16 + $0x8] sm:$0xff]  }
 0x544   : > { %v3373_v41 = vpop.f32.mrb[49].mxu0 }
 0x545   : > { %v2213_v42 = vpop.f32.mrb[50].mxu0 }
 0x546   : > { %v3374_v44 = vpop.f32.mrb[51].mxu0  ;;  %v2256_v45 = vpop.f32.mrb[48].mxu1 }
 0x547   : > { %v2356_v19 = vpack.c.bf16 %v2256_v45, %v2210_v40  ;;  %v3379_v47 = vpop.f32.mrb[49].mxu1 }
 0x548   : > { %v2259_v25 = vpop.f32.mrb[50].mxu1 }
 0x549   : > { %v3380_v48 = vpop.f32.mrb[51].mxu1  ;;  %3408 = vmatmul.mubr.msk.bf16.vlgmr.msra.gmra.mrb[60].mxu0 %vm1512_vm3, %v2356_v19  ;;  %v3092_v25 = vld [vmem:[%s735_s3] ss:$0 sm:$0xff] }
 0x54a   : > { %3421 = vmatprep.mubr.msk.bf16.mxu0 %vm3603_vm1, %v3602_v31  ;;  %3418 = vmatpush3.bf16.msra.mxu0 %v3500_v36  ;;  %v3105_v36 = vld [vmem:[%s744_s27] ss:$0 sm:$0xff] }
 0x54b   : > { %3419 = vmatprep.subr.bf16.mxu0 %v3602_v31 }
 0x54e   : > { %3420 = vmatpush3.bf16.msra.mxu0 %v3501_v37 }
 0x552   : > { %v2302_v49 = vpop.f32.mrb[52].mxu0 }
 0x553   : > { %v3385_v50 = vpop.f32.mrb[53].mxu0 }
 0x554   : > { %v2305_v51 = vpop.f32.mrb[54].mxu0  ;;  %v2348_v52 = vpop.f32.mrb[52].mxu1 }
 0x555   : > { %v2357_v53 = vpack.c.bf16 %v2348_v52, %v2302_v49  ;;  %v3386_v54 = vpop.f32.mrb[55].mxu0  ;;  %v3391_v55 = vpop.f32.mrb[53].mxu1  ;;  %v3093_v52 = vld [vmem:[%s738_s8] ss:$0 sm:$0xff] }
 0x556   : > { %v2351_v56 = vpop.f32.mrb[54].mxu1 }
 0x557   : > { %v3392_v58 = vpop.f32.mrb[55].mxu1  ;;  %3414 = vmatmul.mubr.msk.bf16.vlgmr.msra.gmra.mrb[60].mxu1 %vm1512_vm3, %v2357_v53 }
 0x558   : > { %3433 = vmatprep.mubr.msk.bf16.mxu1 %vm3603_vm1, %v3602_v31  ;;  %3426 = vmatpush3.bf16.msra.mxu1 %v3502_v38  ;;  %v3504_v58 = vld [vmem:[%s3756_s16 + $0x10] sm:$0xff]  }
 0x559   : > { %3427 = vmatprep.subr.bf16.mxu1 %v3602_v31 }
 0x55c   : > { %3428 = vmatpush3.bf16.msra.mxu1 %v3503_v39 }
 0x55d   : > { %3429 = vmatprep.subr.bf16.mxu1 %v3602_v31 }
 0x560   : > { %3430 = vmatpush3.bf16.msra.mxu1 %v3504_v58 }
 0x561   : > { %3431 = vmatprep.subr.bf16.mxu1 %v3602_v31 }
 0x605   : > { %v2445_v43 = vpop.f32.mrb[56].mxu1 }
 0x606   : > { %v3403_v59 = vpop.f32.mrb[57].mxu1 }
 0x607   : > { %v2448_v60 = vpop.f32.mrb[58].mxu1  ;;  %v3094_v59 = vld [vmem:[%s4211_s2] ss:$0 sm:$0xff] }
 0x608   : > { %v3404_v46 = vpop.f32.mrb[59].mxu1 }
 0x614   : > { %v2398_v61 = vpop.f32.mrb[56].mxu0 }
 0x615   : > { %v2446_v63 = vadd.f32 %v2445_v43, %v2398_v61  ;;  %v3397_v0 = vpop.f32.mrb[57].mxu0  ;;  %v3505_v43 = vld [vmem:[%s3756_s16 + $0x18] sm:$0xff]   ;;  %s4212_s16 = scalar_lea.vmem %s4176_s11, %s3715_s26 }
 0x616   : > { %v2401_v1 = vpop.f32.mrb[58].mxu0  ;;  %3432 = vmatpush3.bf16.msra.mxu1 %v3505_v43  ;;  %v3098_v31 = vld [vmem:[%s4212_s16] ss:$0 sm:$0xff] }
 0x617   : > { %v2449_v2 = vadd.f32 %v2448_v60, %v2401_v1  ;;  %v3398_v3 = vpop.f32.mrb[59].mxu0 }
 0x61c   : > { %v2492_v57 = vpop.f32.mrb[60].mxu0 }
 0x61d   : > { %v2499_v4 = vadd.f32 %v2492_v57, %v2446_v63  ;;  %v3409_v5 = vpop.f32.mrb[61].mxu0 }
 0x61e   : > { %v2495_v62 = vpop.f32.mrb[62].mxu0 }
 0x61f   : > { %v2500_v7 = vadd.f32 %v2495_v62, %v2449_v2  ;;  %v3410_v6 = vpop.f32.mrb[63].mxu0 }
 0x62a   : > { %v2541_v8 = vpop.f32.mrb[60].mxu1 }
 0x62b   : > { %v2548_v10 = vadd.f32 %v2541_v8, %v2499_v4  ;;  %v3415_v11 = vpop.f32.mrb[61].mxu1 }
 0x62c   : > { %v2544_v12 = vpop.f32.mrb[62].mxu1 }
 0x62d   : > { %v2557_v13 = vadd.f32 %v3091_v9, %v2548_v10  ;;  %v2549_v14 = vadd.f32 %v2544_v12, %v2500_v7  ;;  %v3416_v15 = vpop.f32.mrb[63].mxu1 }
 0x62f   : > { %v2558_v16 = vadd.f32 %v3091_v9, %v2549_v14  ;;  %v2559_v18 = vadd.f32 %v3546_v17, %v2557_v13 }
 0x631   : > { %v2563_v20 = vsel %vm868_vm2, %v2559_v18, 0.0  ;;  %v2560_v22 = vadd.f32 %v3547_v21, %v2558_v16 }
 0x632   : > { %2564 = vadd.xlane.f32.xlu0 %v2563_v20 }
 0x633   : > { %v2566_v23 = vsel %vm868_vm2, %v2560_v22, 0.0 }
 0x634   : > { %2567 = vadd.xlane.f32.xlu1 %v2566_v23 }
 0x6bf   : > { %v2565_v24 = vpop.xlane.xlu0 %2564 }
 0x6c0   : > { %v2570_v26 = vmul.f32 0.03125, %v2565_v24 }
 0x6c1   : > { %v2568_v27 = vpop.xlane.xlu1 %2567 }
 0x6c2   : > { %v2572_v28 = vsub.f32 %v2559_v18, %v2570_v26  ;;  %v2571_v29 = vmul.f32 0.03125, %v2568_v27 }
 0x6c4   : > { %v2573_v30 = vsub.f32 %v2560_v22, %v2571_v29  ;;  %v2574_v32 = vmul.f32 %v2572_v28, %v2572_v28 }
 0x6c6   : > { %v2576_v33 = vsel %vm868_vm2, %v2574_v32, 0.0  ;;  %v2575_v34 = vmul.f32 %v2573_v30, %v2573_v30 }
 0x6c7   : > { %2577 = vadd.xlane.f32.xlu0 %v2576_v33  ;;  %v3104_v33 = vld [vmem:[%s741_s24] ss:$0 sm:$0xff] }
 0x6c8   : > { %v2579_v35 = vsel %vm868_vm2, %v2575_v34, 0.0 }
 0x6c9   : > { %2580 = vadd.xlane.f32.xlu1 %v2579_v35 }
 0x754   : > { %v2578_v40 = vpop.xlane.xlu0 %2577 }
 0x755   : > { %v2582_v41 = vmul.f32 0.03125, %v2578_v40 }
 0x756   : > { %v2581_v42 = vpop.xlane.xlu1 %2580 }
 0x757   : > { %v2584_v44 = vadd.f32 1e-06, %v2582_v41  ;;  %v2583_v45 = vmul.f32 0.03125, %v2581_v42 }
 0x759   : > { %3538 = vrsqrt.f32 %v2584_v44  ;;  %v2585_v19 = vadd.f32 1e-06, %v2583_v45 }
 0x75b   : > { %3540 = vrsqrt.f32 %v2585_v19 }
 0x763   : > { %v3539_v47 = vpop.eup %3538 }
 0x764   : > { %v2588_v48 = vmul.f32 %v3539_v47, %v2572_v28 }
 0x765   : > { %v3541_v49 = vpop.eup %3540 }
 0x766   : > { %v2596_v50 = vmul.f32 %v3092_v25, %v2588_v48  ;;  %v2589_v51 = vmul.f32 %v3541_v49, %v2573_v30 }
 0x768   : > { %v2597_v53 = vmul.f32 %v3092_v25, %v2589_v51  ;;  %v2604_v54 = vadd.f32 %v3093_v52, %v2596_v50 }
 0x76a   : > { %v2605_v55 = vadd.f32 %v3093_v52, %v2597_v53 }
 0x76c   : > { %v2606_v56 = vpack.c.bf16 %v2605_v55, %v2604_v54 }
 0x76e   : > { %3422 = vmatmul.mubr.msk.bf16.vlgmr.msra.gmra.mrb[64].mxu0 %vm868_vm2, %v2606_v56 }
 0x841   : > { %v2667_v60 = vpop.f32.mrb[64].mxu0 }
 0x842   : > { %v2668_v46 = vadd.f32 %v3094_v59, %v2667_v60  ;;  %v3423_v61 = vpop.f32.mrb[65].mxu0 }
 0x843   : > { %v2670_v63 = vpop.f32.mrb[66].mxu0 }
 0x844   : > { %v2671_v0 = vadd.f32 %v3094_v59, %v2670_v63  ;;  %v3424_v1 = vpop.f32.mrb[67].mxu0  ;;  %v2674_v2 = vmax.f32 %v2668_v46, 0.0 }
 0x846   : > { %v2675_v3 = vmax.f32 %v2671_v0, 0.0 }
 0x848   : > { %v2676_v57 = vpack.c.bf16 %v2675_v3, %v2674_v2 }
 0x84a   : > { %3434 = vmatmul.mubr.msk.bf16.vlgmr.msra.gmra.mrb[64].mxu1 %vm2716_vm5, %v2676_v57 }
 0x91d   : > { %v2754_v4 = vpop.f32.mrb[64].mxu1 }
 0x91e   : > { %v2755_v5 = vadd.f32 %v3098_v31, %v2754_v4  ;;  %v3435_v62 = vpop.f32.mrb[65].mxu1 }
 0x91f   : > { %v2757_v7 = vpop.f32.mrb[66].mxu1 }
 0x920   : > { %v2758_v6 = vadd.f32 %v3098_v31, %v2757_v7  ;;  %v3436_v8 = vpop.f32.mrb[67].mxu1  ;;  %v2761_v9 = vadd.f32 %v2755_v5, %v2604_v54 }
 0x922   : > { %v2765_v10 = vsel %vm868_vm2, %v2761_v9, 0.0  ;;  %v2762_v11 = vadd.f32 %v2758_v6, %v2605_v55 }
 0x923   : > { %2766 = vadd.xlane.f32.xlu0 %v2765_v10 }
 0x924   : > { %v2768_v12 = vsel %vm868_vm2, %v2762_v11, 0.0 }
 0x925   : > { %2769 = vadd.xlane.f32.xlu1 %v2768_v12 }
 0x9b0   : > { %v2767_v13 = vpop.xlane.xlu0 %2766 }
 0x9b1   : > { %v2771_v14 = vmul.f32 0.03125, %v2767_v13 }
 0x9b2   : > { %v2770_v15 = vpop.xlane.xlu1 %2769 }
 0x9b3   : > { %v2773_v16 = vsub.f32 %v2761_v9, %v2771_v14  ;;  %v2772_v17 = vmul.f32 0.03125, %v2770_v15 }
 0x9b5   : > { %v2774_v18 = vsub.f32 %v2762_v11, %v2772_v17  ;;  %v2775_v20 = vmul.f32 %v2773_v16, %v2773_v16 }
 0x9b7   : > { %v2777_v21 = vsel %vm868_vm2, %v2775_v20, 0.0  ;;  %v2776_v22 = vmul.f32 %v2774_v18, %v2774_v18 }
 0x9b8   : > { %2778 = vadd.xlane.f32.xlu0 %v2777_v21 }
 0x9b9   : > { %v2780_v23 = vsel %vm868_vm2, %v2776_v22, 0.0 }
 0x9ba   : > { %2781 = vadd.xlane.f32.xlu1 %v2780_v23 }
 0xa45   : > { %v2779_v24 = vpop.xlane.xlu0 %2778 }
 0xa46   : > { %v2783_v26 = vmul.f32 0.03125, %v2779_v24 }
 0xa47   : > { %v2782_v27 = vpop.xlane.xlu1 %2781 }
 0xa48   : > { %v2785_v28 = vadd.f32 1e-06, %v2783_v26  ;;  %v2784_v29 = vmul.f32 0.03125, %v2782_v27 }
 0xa4a   : > { %3542 = vrsqrt.f32 %v2785_v28  ;;  %v2786_v30 = vadd.f32 1e-06, %v2784_v29 }
 0xa4c   : > { %3544 = vrsqrt.f32 %v2786_v30 }
 0xa54   : > { %v3543_v32 = vpop.eup %3542 }
 0xa55   : > { %v2789_v34 = vmul.f32 %v3543_v32, %v2773_v16 }
 0xa56   : > { %v3545_v35 = vpop.eup %3544 }
 0xa57   : > { %v2797_v37 = vmul.f32 %v3104_v33, %v2789_v34  ;;  %v2790_v38 = vmul.f32 %v3545_v35, %v2774_v18  ;;  %2812 = sbr.rel (%p3106_p6) target bundleno = 2654 (0xa5e), region = 92 }
 0xa59   : > { %v2805_v39 = vadd.f32 %v3105_v36, %v2797_v37  ;;  %v2798_v40 = vmul.f32 %v3104_v33, %v2790_v38 }
 0xa5b   : > { %2807 = vst.msk [vmem:[#allocation2] sm:$0xff] %vm868_vm2, %v2805_v39  ;;  %v2806_v41 = vadd.f32 %v3105_v36, %v2798_v40  ;;  %2813 = vst.msk [vmem:[#allocation3] sm:$0xff] (!%p3106_p6), %vm868_vm2, %v2805_v39 }
 0xa5d   : > { %2808 = vst.msk [vmem:[#allocation2 + $0x8] sm:$0xff] %vm868_vm2, %v2806_v41  ;;  %2814 = vst.msk [vmem:[#allocation3 + $0x8] sm:$0xff] (!%p3106_p6), %vm868_vm2, %v2806_v41 }
 0xa5e PF: > { %s4213_s24 = sld [smem:[#allocation7_spill]]  ;;  %s3604_s5 = smov [#allocation3]  }
 0xa5f   : > { %s2824_s23 = sshll.u32 %s3604_s5, 4  ;;  %s2825_s23 = int_to_ptr.vmem [resolvable:$true] %s2824_s23 }
 0xa60   : > { %s3548_s25 = scalar_lea.vmem %s2825_s23, 256  ;;  %p3555_p11 = scmp.lt.s32.totalorder %s2825_s23, %s2825_s23 }
 0xa61   : > { %p3549_p8 = scmp.ne.s32.totalorder %s2825_s23, %s3548_s25  ;;  %p3556_p12 = scmp.lt.s32.totalorder %s3548_s25, %s3548_s25 }
 0xa63   : > { %p3557_p13 = por %p3556_p12, %p3555_p11 }
 0xa64   : > { %s4214_s26 = sadd.s32 4294967295, %s4213_s24  }
 0xa65   : > { %p4130_p7 = scmp.eq.s32.totalorder %s4214_s26, 1 }
 0xa67   : > { %p3550_p9 = pnand %p3549_p8, %p4130_p7 }
 0xa69   : > { %p3551_p10 = pneg %p3550_p9 }
 0xa6b   : > { %p3558_p0 = pnand %p3557_p13, %p3551_p10 }
 0xa6d   : > { %3561 = shalt.err (!%p3558_p0)
}
 0xa6e   : > { %s4216_s19 = sld [smem:[#allocation18_spill]] }
 0xa74   : > { %s3562_s17 = scalar_lea.hbm %s4216_s19, 256 }
 0xa75   : > { %p3563_p1 = scmp.ne.s32.totalorder %s4216_s19, %s3562_s17  ;;  %p3568_p4 = scmp.lt.u32.totalorder %s3562_s17, %s4216_s19 }
 0xa77   : > { %p3564_p2 = pnand %p3563_p1, %p4130_p7 }
 0xa79   : > { %p3565_p3 = pneg %p3564_p2 }
 0xa7b   : > { %p3570_p5 = pnand %p3568_p4, %p3565_p3 }
 0xa7d   : > { %3573 = shalt.err (!%p3570_p5)
}
 0xa7e   : > { %s3605_s29 = smov 128   ;;  %s3606_s2 = smov 8  }
 0xa7f   : > { %3438 = dma.vmem_to_hbm [thread:$0]  (%p4130_p7), %s2825_s23, 256, %s4216_s19, [#allocation4], %s3605_s29, %s3605_s29, %s3606_s2  }
 0xa80   : > { %3587 = dma.done.wait (%p4130_p7), [#allocation4], 256  }
 0xa81   : > { %3589 = vsyncadd (%p4130_p7), [#allocation4], 4294967040 }
 0xa82 PF: > { %s4217_s16 = sld [smem:[#allocation7_spill]]  ;;  %s4218_s21 = sld [smem:[#allocation6_spill]] }
 0xa83   : > { %s4219_s22 = sld [smem:[#allocation8_spill]] }
 0xa88   : > { %s27_s23 = sadd.s32 1, %s4217_s16  }
 0xa89   : > { %p24_p6 = scmp.ge.s32.totalorder %s27_s23, 4  }
 0xa8b   :  { %26 = sbr.rel (!%p24_p6) target bundleno = 13 (0xd), region = 159 }
 0xa92   :  { %2840 = vsyncpa [#allocation4], 1 }
 0xa93   :  { %2842 = vsyncpa [#allocation4 + $0x1], 1 }

</bundles_post_ra>
